<compile_context>
chip_gen: v6e
topology: v6e:2x2x1
jax: 0.10.0
libtpu: 0.0.40
codegen_flags: <defaults>
</compile_context>

<pallas_src>
import functools
import math

import jax
import jax.numpy as jnp
from jax.experimental import pallas as pl
from jax.experimental.pallas import tpu as pltpu


def _pick_tile(dim, target):
    """Use `target` if it evenly tiles `dim`, else fall back to the full dim."""
    return target if dim % target == 0 else dim


# ----------------------------- tiled linear (bf16 MXU, f32 accumulator) -----

def _linear_kernel(x_ref, w_ref, b_ref, o_ref, acc_ref, *, activation):
    k = pl.program_id(2)

    @pl.when(k == 0)
    def _():
        acc_ref[...] = jnp.zeros_like(acc_ref)

    acc_ref[...] += jnp.dot(x_ref[...], w_ref[...],
                            preferred_element_type=jnp.float32)

    @pl.when(k == pl.num_programs(2) - 1)
    def _():
        y = acc_ref[...] + b_ref[...]              # bias only in the epilogue
        if activation == "gelu":                   # exact (erf) GELU as in BERT
            y = 0.5 * y * (1.0 + jax.lax.erf(y * (1.0 / math.sqrt(2.0))))
        o_ref[...] = y.astype(o_ref.dtype)


def pallas_linear(x, w, b, activation=None, *, tm=256, tn=256, tk=512,
                  out_dtype=jnp.bfloat16):
    M, K = x.shape
    K2, N = w.shape
    assert K == K2
    tm = _pick_tile(M, tm)
    tn = _pick_tile(N, tn)
    tk = _pick_tile(K, tk)
    grid = (M // tm, N // tn, K // tk)

    cost = pl.CostEstimate(
        flops=2 * M * N * K,
        transcendentals=(M * N if activation == "gelu" else 0),
        bytes_accessed=(M * K + K * N + M * N) * 2 + N * 4)

    return pl.pallas_call(
        functools.partial(_linear_kernel, activation=activation),
        out_shape=jax.ShapeDtypeStruct((M, N), out_dtype),
        grid=grid,
        in_specs=[
            pl.BlockSpec((tm, tk), lambda i, j, k: (i, k)),
            pl.BlockSpec((tk, tn), lambda i, j, k: (k, j)),
            pl.BlockSpec((1, tn), lambda i, j, k: (0, j)),
        ],
        out_specs=pl.BlockSpec((tm, tn), lambda i, j, k: (i, j)),
        scratch_shapes=[pltpu.VMEM((tm, tn), jnp.float32)],
        compiler_params=pltpu.CompilerParams(
            dimension_semantics=("parallel", "parallel", "arbitrary")),
        cost_estimate=cost,
    )(x.astype(jnp.bfloat16), w.astype(jnp.bfloat16), b.reshape(1, N))


# ----------------------------- LayerNorm (+ fused residual add) -------------

def _ln_body(x, g_ref, b_ref, o_ref, eps):
    mean = jnp.mean(x, axis=-1, keepdims=True)
    xc = x - mean
    var = jnp.mean(xc * xc, axis=-1, keepdims=True)
    inv = jax.lax.rsqrt(var + eps)
    o_ref[...] = (xc * inv * g_ref[...] + b_ref[...]).astype(o_ref.dtype)


def _layernorm_kernel(x_ref, g_ref, b_ref, o_ref, *, eps):
    _ln_body(x_ref[...].astype(jnp.float32), g_ref, b_ref, o_ref, eps)


def _add_layernorm_kernel(x_ref, r_ref, g_ref, b_ref, o_ref, *, eps):
    xs = x_ref[...].astype(jnp.float32) + r_ref[...].astype(jnp.float32)
    _ln_body(xs, g_ref, b_ref, o_ref, eps)


def pallas_layernorm(x, gamma, beta, residual=None, eps=1e-12, *,
                     tm=256, out_dtype=jnp.bfloat16):
    M, H = x.shape
    tm = _pick_tile(M, tm)
    grid = (M // tm,)
    g2 = gamma.reshape(1, H)
    b2 = beta.reshape(1, H)
    row_spec = pl.BlockSpec((tm, H), lambda i: (i, 0))
    vec_spec = pl.BlockSpec((1, H), lambda i: (0, 0))

    if residual is None:
        kern = functools.partial(_layernorm_kernel, eps=eps)
        in_specs = [row_spec, vec_spec, vec_spec]
        args = (x, g2, b2)
    else:
        kern = functools.partial(_add_layernorm_kernel, eps=eps)
        in_specs = [row_spec, row_spec, vec_spec, vec_spec]
        args = (x, residual, g2, b2)

    return pl.pallas_call(
        kern,
        out_shape=jax.ShapeDtypeStruct((M, H), out_dtype),
        grid=grid,
        in_specs=in_specs,
        out_specs=row_spec,
        compiler_params=pltpu.CompilerParams(
            dimension_semantics=("parallel",)),
    )(*args)


# ----------------------------- multi-head self-attention --------------------

def _attention_kernel(qkv_ref, o_ref, *, num_heads, head_dim, scale):
    # qkv_ref: (S, 3H) for one batch element, columns = [q_heads|k_heads|v_heads]
    H = num_heads * head_dim
    qkv = qkv_ref[...]
    outs = []
    for h in range(num_heads):
        lo = h * head_dim
        q = qkv[:, lo:lo + head_dim] * scale            # scale folded into q
        k = qkv[:, H + lo:H + lo + head_dim]
        v = qkv[:, 2 * H + lo:2 * H + lo + head_dim]
        s = jax.lax.dot_general(q, k, (((1,), (1,)), ((), ())),
                                preferred_element_type=jnp.float32)   # (S, S)
        m = jnp.max(s, axis=-1, keepdims=True)
        p = jnp.exp(s - m)
        denom = jnp.sum(p, axis=-1, keepdims=True)
        p = (p * pl.reciprocal(denom, approx=True)).astype(v.dtype)
        outs.append(jnp.dot(p, v, preferred_element_type=jnp.float32))
    # lane-dense single store of the full (S, H) context slab
    o_ref[...] = jnp.concatenate(outs, axis=-1).astype(o_ref.dtype)


def pallas_attention(qkv, *, num_heads, head_dim, out_dtype=jnp.bfloat16):
    # qkv: [B, S, 3H] bf16 (fused Q/K/V projection output, no transposes)
    B, S, threeH = qkv.shape
    H = num_heads * head_dim
    scale = 1.0 / math.sqrt(head_dim)
    cost = pl.CostEstimate(
        flops=4 * B * num_heads * S * S * head_dim,
        transcendentals=B * num_heads * S * S,
        bytes_accessed=(B * S * threeH + B * S * H) * 2)
    return pl.pallas_call(
        functools.partial(_attention_kernel, num_heads=num_heads,
                          head_dim=head_dim, scale=scale),
        out_shape=jax.ShapeDtypeStruct((B, S, H), out_dtype),
        grid=(B,),
        in_specs=[pl.BlockSpec((None, S, threeH), lambda b: (b, 0, 0))],
        out_specs=pl.BlockSpec((None, S, H), lambda b: (b, 0, 0)),
        compiler_params=pltpu.CompilerParams(
            dimension_semantics=("parallel",)),
        cost_estimate=cost,
    )(qkv)


# ----------------------------- BERT model (synthetic frozen weights) --------

class BertConfig:
    vocab_size = 100
    max_position = 32
    type_vocab_size = 2
    hidden = 32
    num_heads = 4
    intermediate = 64
    num_layers = 2
    ln_eps = 1e-12


def init_params(cfg, key):
    def nrm(k, shape, dtype=jnp.float32):
        return (0.02 * jax.random.normal(k, shape, dtype=jnp.float32)).astype(dtype)

    H, I = cfg.hidden, cfg.intermediate
    keys = iter(jax.random.split(key, 4 + cfg.num_layers * 8))
    p = {
        "word_emb": nrm(next(keys), (cfg.vocab_size, H)),
        "pos_emb": nrm(next(keys), (cfg.max_position, H)),
        "type_emb": nrm(next(keys), (cfg.type_vocab_size, H)),
        "emb_ln_g": jnp.ones((H,), jnp.float32),
        "emb_ln_b": jnp.zeros((H,), jnp.float32),
        "layers": [],
    }
    for _ in range(cfg.num_layers):
        layer = {
            # fused [wq | wk | wv]; frozen weights stored bf16 for the MXU
            "w_qkv": nrm(next(keys), (H, 3 * H), jnp.bfloat16),
            "b_qkv": jnp.zeros((3 * H,), jnp.float32),
            "wo": nrm(next(keys), (H, H), jnp.bfloat16),
            "bo": jnp.zeros((H,), jnp.float32),
            "ln1_g": jnp.ones((H,), jnp.float32),
            "ln1_b": jnp.zeros((H,), jnp.float32),
            "w1": nrm(next(keys), (H, I), jnp.bfloat16),
            "b1": jnp.zeros((I,), jnp.float32),
            "w2": nrm(next(keys), (I, H), jnp.bfloat16),
            "b2": jnp.zeros((H,), jnp.float32),
            "ln2_g": jnp.ones((H,), jnp.float32),
            "ln2_b": jnp.zeros((H,), jnp.float32),
        }
        p["layers"].append(layer)
    return p


def bert_forward(params, input_ids, cfg):
    B, S = input_ids.shape
    H, NH = cfg.hidden, cfg.num_heads
    D = H // NH

    # ---- embeddings (gather is glue, in plain JAX) ----
    word = jnp.take(params["word_emb"], input_ids, axis=0)          # [B, S, H]
    pos = params["pos_emb"][:S][None, :, :]                         # [1, S, H]
    typ = params["type_emb"][0][None, None, :]                      # token_type_ids = 0
    emb = (word + pos + typ).reshape(B * S, H)
    x = pallas_layernorm(emb, params["emb_ln_g"], params["emb_ln_b"],
                         eps=cfg.ln_eps)                            # bf16 [B*S, H]

    for layer in params["layers"]:
        # ---- multi-head self-attention (fused QKV, no transposes) ----
        qkv = pallas_linear(x, layer["w_qkv"], layer["b_qkv"])      # [B*S, 3H]
        ctx = pallas_attention(qkv.reshape(B, S, 3 * H),
                               num_heads=NH, head_dim=D)            # [B, S, H]
        attn_out = pallas_linear(ctx.reshape(B * S, H),
                                 layer["wo"], layer["bo"])
        # residual add fused into the LayerNorm kernel
        x = pallas_layernorm(x, layer["ln1_g"], layer["ln1_b"],
                             residual=attn_out, eps=cfg.ln_eps)

        # ---- feed-forward ----
        h = pallas_linear(x, layer["w1"], layer["b1"], activation="gelu")
        ff = pallas_linear(h, layer["w2"], layer["b2"])
        x = pallas_layernorm(x, layer["ln2_g"], layer["ln2_b"],
                             residual=ff, eps=cfg.ln_eps)

    # last_hidden_state, == bert(inputs)[0]
    return x.astype(jnp.float32).reshape(B, S, H)


# ----------------------------- main -----------------------------

if __name__ == "__main__":
    cfg = BertConfig()
    key = jax.random.PRNGKey(0)
    k_param, k_ids = jax.random.split(key)

    params = init_params(cfg, k_param)

    B, S = 2, 8
    input_ids = jax.random.randint(k_ids, (B, S), 0, cfg.vocab_size,
                                   dtype=jnp.int32)

    fwd = jax.jit(functools.partial(bert_forward, cfg=cfg))
    out = fwd(params, input_ids)
    out = jax.block_until_ready(out)
    assert out.shape == (B, S, cfg.hidden)
    assert jnp.all(jnp.isfinite(out))
    print("KERNEL_OK")
</pallas_src>

<mosaic_0001>
module attributes {stable_mosaic.version = 11 : i64} {
  func.func @_layernorm_kernel(%arg0: i32, %arg1: memref<16x32xf32, #tpu.memory_space<vmem>>, %arg2: memref<1x32xf32, #tpu.memory_space<vmem>>, %arg3: memref<1x32xf32, #tpu.memory_space<vmem>>, %arg4: memref<16x32xbf16, #tpu.memory_space<vmem>>) attributes {dimension_semantics = [#tpu.dimension_semantics<parallel>], iteration_bounds = array<i64: 1>, scalar_prefetch = 0 : i64, scratch_operands = 0 : i64, tpu.core_type = #tpu.core_type<tc>, window_params = [{transform_indices = @transform_0, window_bounds = array<i64: 16, 32>}, {pipeline_mode = #tpu.pipeline_mode<synchronous>, transform_indices = @transform_1, window_bounds = array<i64: 1, 32>}, {pipeline_mode = #tpu.pipeline_mode<synchronous>, transform_indices = @transform_2, window_bounds = array<i64: 1, 32>}, {transform_indices = @transform_3, window_bounds = array<i64: 16, 32>}]} {
    %c0 = arith.constant 0 : index
    %c0_0 = arith.constant 0 : index
    %0 = vector.load %arg1[%c0, %c0_0] : memref<16x32xf32, #tpu.memory_space<vmem>>, vector<16x32xf32>
    %cst = arith.constant dense<0.000000e+00> : vector<16xf32>
    %1 = vector.multi_reduction <add>, %0, %cst [1] : vector<16x32xf32> to vector<16xf32>
    %2 = vector.shape_cast %1 : vector<16xf32> to vector<16x1xf32>
    %cst_1 = arith.constant 3.200000e+01 : f32
    %3 = vector.broadcast %cst_1 : f32 to vector<16x1xf32>
    %4 = arith.divf %2, %3 : vector<16x1xf32>
    %5 = vector.broadcast %4 : vector<16x1xf32> to vector<16x32xf32>
    %6 = arith.subf %0, %5 : vector<16x32xf32>
    %7 = arith.mulf %6, %6 : vector<16x32xf32>
    %cst_2 = arith.constant dense<0.000000e+00> : vector<16xf32>
    %8 = vector.multi_reduction <add>, %7, %cst_2 [1] : vector<16x32xf32> to vector<16xf32>
    %9 = vector.shape_cast %8 : vector<16xf32> to vector<16x1xf32>
    %cst_3 = arith.constant 3.200000e+01 : f32
    %10 = vector.broadcast %cst_3 : f32 to vector<16x1xf32>
    %11 = arith.divf %9, %10 : vector<16x1xf32>
    %cst_4 = arith.constant 9.99999996E-13 : f32
    %12 = vector.broadcast %cst_4 : f32 to vector<16x1xf32>
    %13 = arith.addf %11, %12 : vector<16x1xf32>
    %14 = math.rsqrt %13 : vector<16x1xf32>
    %15 = vector.broadcast %14 : vector<16x1xf32> to vector<16x32xf32>
    %16 = arith.mulf %6, %15 : vector<16x32xf32>
    %c0_5 = arith.constant 0 : index
    %c0_6 = arith.constant 0 : index
    %17 = vector.load %arg2[%c0_5, %c0_6] : memref<1x32xf32, #tpu.memory_space<vmem>>, vector<1x32xf32>
    %18 = vector.broadcast %17 : vector<1x32xf32> to vector<16x32xf32>
    %19 = arith.mulf %16, %18 : vector<16x32xf32>
    %c0_7 = arith.constant 0 : index
    %c0_8 = arith.constant 0 : index
    %20 = vector.load %arg3[%c0_7, %c0_8] : memref<1x32xf32, #tpu.memory_space<vmem>>, vector<1x32xf32>
    %21 = vector.broadcast %20 : vector<1x32xf32> to vector<16x32xf32>
    %22 = arith.addf %19, %21 : vector<16x32xf32>
    %23 = arith.truncf %22 : vector<16x32xf32> to vector<16x32xbf16>
    %c0_9 = arith.constant 0 : index
    %c0_10 = arith.constant 0 : index
    %24 = vector.load %arg4[%c0_9, %c0_10] : memref<16x32xbf16, #tpu.memory_space<vmem>>, vector<16x32xbf16>
    tpu.vector_store %arg4[%c0_9, %c0_10], %23 {strides = array<i32>} : memref<16x32xbf16, #tpu.memory_space<vmem>>, vector<16x32xbf16>,
    return
  }
  func.func @transform_0(%arg0: i32) -> (i32, i32) {
    %c0_i32 = arith.constant 0 : i32
    %c0_i32_0 = arith.constant 0 : i32
    return %arg0, %c0_i32 : i32, i32
  }
  func.func @transform_1(%arg0: i32) -> (i32, i32) {
    %c0_i32 = arith.constant 0 : i32
    %c0_i32_0 = arith.constant 0 : i32
    %c0_i32_1 = arith.constant 0 : i32
    return %c0_i32, %c0_i32_0 : i32, i32
  }
  func.func @transform_2(%arg0: i32) -> (i32, i32) {
    %c0_i32 = arith.constant 0 : i32
    %c0_i32_0 = arith.constant 0 : i32
    %c0_i32_1 = arith.constant 0 : i32
    return %c0_i32, %c0_i32_0 : i32, i32
  }
  func.func @transform_3(%arg0: i32) -> (i32, i32) {
    %c0_i32 = arith.constant 0 : i32
    %c0_i32_0 = arith.constant 0 : i32
    return %arg0, %c0_i32 : i32, i32
  }
}

module attributes {stable_mosaic.version = 11 : i64} {
  func.func @_linear_kernel(%arg0: i32, %arg1: i32, %arg2: i32, %arg3: memref<16x32xbf16, #tpu.memory_space<vmem>>, %arg4: memref<32x96xbf16, #tpu.memory_space<vmem>>, %arg5: memref<1x96xf32, #tpu.memory_space<vmem>>, %arg6: memref<16x96xbf16, #tpu.memory_space<vmem>>, %arg7: memref<16x96xf32, #tpu.memory_space<vmem>>) attributes {dimension_semantics = [#tpu.dimension_semantics<parallel>, #tpu.dimension_semantics<parallel>, #tpu.dimension_semantics<arbitrary>], iteration_bounds = array<i64: 1, 1, 1>, scalar_prefetch = 0 : i64, scratch_operands = 1 : i64, tpu.core_type = #tpu.core_type<tc>, window_params = [{transform_indices = @transform_0, window_bounds = array<i64: 16, 32>}, {transform_indices = @transform_1, window_bounds = array<i64: 32, 96>}, {transform_indices = @transform_2, window_bounds = array<i64: 1, 96>}, {transform_indices = @transform_3, window_bounds = array<i64: 16, 96>}]} {
    %c0_i32 = arith.constant 0 : i32
    %0 = arith.cmpi eq, %arg2, %c0_i32 : i32
    %1 = arith.extui %0 : i1 to i32
    %c0_i32_0 = arith.constant 0 : i32
    %2 = arith.cmpi ne, %1, %c0_i32_0 : i32
    scf.if %2 {
      %cst_10 = arith.constant 0.000000e+00 : f32
      %12 = vector.broadcast %cst_10 : f32 to vector<16x96xf32>
      %c0_11 = arith.constant 0 : index
      %c0_12 = arith.constant 0 : index
      %13 = vector.load %arg7[%c0_11, %c0_12] : memref<16x96xf32, #tpu.memory_space<vmem>>, vector<16x96xf32>
      tpu.vector_store %arg7[%c0_11, %c0_12], %12 {strides = array<i32>} : memref<16x96xf32, #tpu.memory_space<vmem>>, vector<16x96xf32>,
    } else {
    }
    %c0 = arith.constant 0 : index
    %c0_1 = arith.constant 0 : index
    %3 = vector.load %arg7[%c0, %c0_1] : memref<16x96xf32, #tpu.memory_space<vmem>>, vector<16x96xf32>
    %c0_2 = arith.constant 0 : index
    %c0_3 = arith.constant 0 : index
    %4 = vector.load %arg3[%c0_2, %c0_3] : memref<16x32xbf16, #tpu.memory_space<vmem>>, vector<16x32xbf16>
    %c0_4 = arith.constant 0 : index
    %c0_5 = arith.constant 0 : index
    %5 = vector.load %arg4[%c0_4, %c0_5] : memref<32x96xbf16, #tpu.memory_space<vmem>>, vector<32x96xbf16>
    %cst = arith.constant dense<0.000000e+00> : vector<16x96xf32>
    %6 = tpu.matmul %4, %5, %cst {dimension_numbers = #tpu.dot_dimension_numbers<[1], [0], [0], [1], [0, 0, 1, 1], [], []>} : vector<16x32xbf16>, vector<32x96xbf16>, vector<16x96xf32> -> vector<16x96xf32>
    %7 = arith.addf %3, %6 : vector<16x96xf32>
    %c0_6 = arith.constant 0 : index
    %c0_7 = arith.constant 0 : index
    %8 = vector.load %arg7[%c0_6, %c0_7] : memref<16x96xf32, #tpu.memory_space<vmem>>, vector<16x96xf32>
    tpu.vector_store %arg7[%c0_6, %c0_7], %7 {strides = array<i32>} : memref<16x96xf32, #tpu.memory_space<vmem>>, vector<16x96xf32>,
    %c0_i32_8 = arith.constant 0 : i32
    %9 = arith.cmpi eq, %arg2, %c0_i32_8 : i32
    %10 = arith.extui %9 : i1 to i32
    %c0_i32_9 = arith.constant 0 : i32
    %11 = arith.cmpi ne, %10, %c0_i32_9 : i32
    scf.if %11 {
      %c0_10 = arith.constant 0 : index
      %c0_11 = arith.constant 0 : index
      %12 = vector.load %arg7[%c0_10, %c0_11] : memref<16x96xf32, #tpu.memory_space<vmem>>, vector<16x96xf32>
      %c0_12 = arith.constant 0 : index
      %c0_13 = arith.constant 0 : index
      %13 = vector.load %arg5[%c0_12, %c0_13] : memref<1x96xf32, #tpu.memory_space<vmem>>, vector<1x96xf32>
      %14 = vector.broadcast %13 : vector<1x96xf32> to vector<16x96xf32>
      %15 = arith.addf %12, %14 : vector<16x96xf32>
      %16 = arith.truncf %15 : vector<16x96xf32> to vector<16x96xbf16>
      %c0_14 = arith.constant 0 : index
      %c0_15 = arith.constant 0 : index
      %17 = vector.load %arg6[%c0_14, %c0_15] : memref<16x96xbf16, #tpu.memory_space<vmem>>, vector<16x96xbf16>
      tpu.vector_store %arg6[%c0_14, %c0_15], %16 {strides = array<i32>} : memref<16x96xbf16, #tpu.memory_space<vmem>>, vector<16x96xbf16>,
    } else {
    }
    return
  }
  func.func @transform_0(%arg0: i32, %arg1: i32, %arg2: i32) -> (i32, i32) {
    %c0_i32 = arith.constant 0 : i32
    return %arg0, %arg2 : i32, i32
  }
  func.func @transform_1(%arg0: i32, %arg1: i32, %arg2: i32) -> (i32, i32) {
    %c0_i32 = arith.constant 0 : i32
    return %arg2, %arg1 : i32, i32
  }
  func.func @transform_2(%arg0: i32, %arg1: i32, %arg2: i32) -> (i32, i32) {
    %c0_i32 = arith.constant 0 : i32
    %c0_i32_0 = arith.constant 0 : i32
    return %c0_i32, %arg1 : i32, i32
  }
  func.func @transform_3(%arg0: i32, %arg1: i32, %arg2: i32) -> (i32, i32) {
    %c0_i32 = arith.constant 0 : i32
    return %arg0, %arg1 : i32, i32
  }
}

module attributes {stable_mosaic.version = 11 : i64} {
  func.func @_attention_kernel(%arg0: i32, %arg1: memref<1x8x96xbf16, #tpu.memory_space<vmem>>, %arg2: memref<1x8x32xbf16, #tpu.memory_space<vmem>>) attributes {dimension_semantics = [#tpu.dimension_semantics<parallel>], iteration_bounds = array<i64: 2>, scalar_prefetch = 0 : i64, scratch_operands = 0 : i64, tpu.core_type = #tpu.core_type<tc>, window_params = [{transform_indices = @transform_0, window_bounds = array<i64: 1, 8, 96>}, {transform_indices = @transform_1, window_bounds = array<i64: 1, 8, 32>}]} {
    %c0 = arith.constant 0 : index
    %c0_0 = arith.constant 0 : index
    %c0_1 = arith.constant 0 : index
    %0 = vector.load %arg1[%c0, %c0_0, %c0_1] : memref<1x8x96xbf16, #tpu.memory_space<vmem>>, vector<1x8x96xbf16>
    %1 = vector.shape_cast %0 : vector<1x8x96xbf16> to vector<8x96xbf16>
    %2 = vector.extract_strided_slice %1 {offsets = [0, 0], sizes = [8, 8], strides = [1, 1]} : vector<8x96xbf16> to vector<8x8xbf16>
    %cst = arith.constant 3.535160e-01 : bf16
    %3 = vector.broadcast %cst : bf16 to vector<8x8xbf16>
    %4 = arith.mulf %2, %3 : vector<8x8xbf16>
    %5 = vector.extract_strided_slice %1 {offsets = [0, 32], sizes = [8, 8], strides = [1, 1]} : vector<8x96xbf16> to vector<8x8xbf16>
    %6 = vector.extract_strided_slice %1 {offsets = [0, 64], sizes = [8, 8], strides = [1, 1]} : vector<8x96xbf16> to vector<8x8xbf16>
    %cst_2 = arith.constant dense<0.000000e+00> : vector<8x8xf32>
    %7 = tpu.matmul %4, %5, %cst_2 {dimension_numbers = #tpu.dot_dimension_numbers<[1], [1], [0], [0], [0, 0, 1, 0], [], []>} : vector<8x8xbf16>, vector<8x8xbf16>, vector<8x8xf32> -> vector<8x8xf32>
    %cst_3 = arith.constant dense<0xFF800000> : vector<8xf32>
    %8 = vector.multi_reduction <maximumf>, %7, %cst_3 [1] : vector<8x8xf32> to vector<8xf32>
    %9 = vector.shape_cast %8 : vector<8xf32> to vector<8x1xf32>
    %10 = vector.broadcast %9 : vector<8x1xf32> to vector<8x8xf32>
    %11 = arith.subf %7, %10 : vector<8x8xf32>
    %12 = math.exp %11 : vector<8x8xf32>
    %cst_4 = arith.constant dense<0.000000e+00> : vector<8xf32>
    %13 = vector.multi_reduction <add>, %12, %cst_4 [1] : vector<8x8xf32> to vector<8xf32>
    %14 = vector.shape_cast %13 : vector<8xf32> to vector<8x1xf32>
    %15 = tpu.reciprocal %14 {approx = true} : vector<8x1xf32> -> vector<8x1xf32>
    %16 = vector.broadcast %15 : vector<8x1xf32> to vector<8x8xf32>
    %17 = arith.mulf %12, %16 : vector<8x8xf32>
    %18 = arith.truncf %17 : vector<8x8xf32> to vector<8x8xbf16>
    %cst_5 = arith.constant dense<0.000000e+00> : vector<8x8xf32>
    %19 = tpu.matmul %18, %6, %cst_5 {dimension_numbers = #tpu.dot_dimension_numbers<[1], [0], [0], [1], [0, 0, 1, 1], [], []>} : vector<8x8xbf16>, vector<8x8xbf16>, vector<8x8xf32> -> vector<8x8xf32>
    %20 = vector.extract_strided_slice %1 {offsets = [0, 8], sizes = [8, 8], strides = [1, 1]} : vector<8x96xbf16> to vector<8x8xbf16>
    %cst_6 = arith.constant 3.535160e-01 : bf16
    %21 = vector.broadcast %cst_6 : bf16 to vector<8x8xbf16>
    %22 = arith.mulf %20, %21 : vector<8x8xbf16>
    %23 = vector.extract_strided_slice %1 {offsets = [0, 40], sizes = [8, 8], strides = [1, 1]} : vector<8x96xbf16> to vector<8x8xbf16>
    %24 = vector.extract_strided_slice %1 {offsets = [0, 72], sizes = [8, 8], strides = [1, 1]} : vector<8x96xbf16> to vector<8x8xbf16>
    %cst_7 = arith.constant dense<0.000000e+00> : vector<8x8xf32>
    %25 = tpu.matmul %22, %23, %cst_7 {dimension_numbers = #tpu.dot_dimension_numbers<[1], [1], [0], [0], [0, 0, 1, 0], [], []>} : vector<8x8xbf16>, vector<8x8xbf16>, vector<8x8xf32> -> vector<8x8xf32>
    %cst_8 = arith.constant dense<0xFF800000> : vector<8xf32>
    %26 = vector.multi_reduction <maximumf>, %25, %cst_8 [1] : vector<8x8xf32> to vector<8xf32>
    %27 = vector.shape_cast %26 : vector<8xf32> to vector<8x1xf32>
    %28 = vector.broadcast %27 : vector<8x1xf32> to vector<8x8xf32>
    %29 = arith.subf %25, %28 : vector<8x8xf32>
    %30 = math.exp %29 : vector<8x8xf32>
    %cst_9 = arith.constant dense<0.000000e+00> : vector<8xf32>
    %31 = vector.multi_reduction <add>, %30, %cst_9 [1] : vector<8x8xf32> to vector<8xf32>
    %32 = vector.shape_cast %31 : vector<8xf32> to vector<8x1xf32>
    %33 = tpu.reciprocal %32 {approx = true} : vector<8x1xf32> -> vector<8x1xf32>
    %34 = vector.broadcast %33 : vector<8x1xf32> to vector<8x8xf32>
    %35 = arith.mulf %30, %34 : vector<8x8xf32>
    %36 = arith.truncf %35 : vector<8x8xf32> to vector<8x8xbf16>
    %cst_10 = arith.constant dense<0.000000e+00> : vector<8x8xf32>
    %37 = tpu.matmul %36, %24, %cst_10 {dimension_numbers = #tpu.dot_dimension_numbers<[1], [0], [0], [1], [0, 0, 1, 1], [], []>} : vector<8x8xbf16>, vector<8x8xbf16>, vector<8x8xf32> -> vector<8x8xf32>
    %38 = vector.extract_strided_slice %1 {offsets = [0, 16], sizes = [8, 8], strides = [1, 1]} : vector<8x96xbf16> to vector<8x8xbf16>
    %cst_11 = arith.constant 3.535160e-01 : bf16
    %39 = vector.broadcast %cst_11 : bf16 to vector<8x8xbf16>
    %40 = arith.mulf %38, %39 : vector<8x8xbf16>
    %41 = vector.extract_strided_slice %1 {offsets = [0, 48], sizes = [8, 8], strides = [1, 1]} : vector<8x96xbf16> to vector<8x8xbf16>
    %42 = vector.extract_strided_slice %1 {offsets = [0, 80], sizes = [8, 8], strides = [1, 1]} : vector<8x96xbf16> to vector<8x8xbf16>
    %cst_12 = arith.constant dense<0.000000e+00> : vector<8x8xf32>
    %43 = tpu.matmul %40, %41, %cst_12 {dimension_numbers = #tpu.dot_dimension_numbers<[1], [1], [0], [0], [0, 0, 1, 0], [], []>} : vector<8x8xbf16>, vector<8x8xbf16>, vector<8x8xf32> -> vector<8x8xf32>
    %cst_13 = arith.constant dense<0xFF800000> : vector<8xf32>
    %44 = vector.multi_reduction <maximumf>, %43, %cst_13 [1] : vector<8x8xf32> to vector<8xf32>
    %45 = vector.shape_cast %44 : vector<8xf32> to vector<8x1xf32>
    %46 = vector.broadcast %45 : vector<8x1xf32> to vector<8x8xf32>
    %47 = arith.subf %43, %46 : vector<8x8xf32>
    %48 = math.exp %47 : vector<8x8xf32>
    %cst_14 = arith.constant dense<0.000000e+00> : vector<8xf32>
    %49 = vector.multi_reduction <add>, %48, %cst_14 [1] : vector<8x8xf32> to vector<8xf32>
    %50 = vector.shape_cast %49 : vector<8xf32> to vector<8x1xf32>
    %51 = tpu.reciprocal %50 {approx = true} : vector<8x1xf32> -> vector<8x1xf32>
    %52 = vector.broadcast %51 : vector<8x1xf32> to vector<8x8xf32>
    %53 = arith.mulf %48, %52 : vector<8x8xf32>
    %54 = arith.truncf %53 : vector<8x8xf32> to vector<8x8xbf16>
    %cst_15 = arith.constant dense<0.000000e+00> : vector<8x8xf32>
    %55 = tpu.matmul %54, %42, %cst_15 {dimension_numbers = #tpu.dot_dimension_numbers<[1], [0], [0], [1], [0, 0, 1, 1], [], []>} : vector<8x8xbf16>, vector<8x8xbf16>, vector<8x8xf32> -> vector<8x8xf32>
    %56 = vector.extract_strided_slice %1 {offsets = [0, 24], sizes = [8, 8], strides = [1, 1]} : vector<8x96xbf16> to vector<8x8xbf16>
    %cst_16 = arith.constant 3.535160e-01 : bf16
    %57 = vector.broadcast %cst_16 : bf16 to vector<8x8xbf16>
    %58 = arith.mulf %56, %57 : vector<8x8xbf16>
    %59 = vector.extract_strided_slice %1 {offsets = [0, 56], sizes = [8, 8], strides = [1, 1]} : vector<8x96xbf16> to vector<8x8xbf16>
    %60 = vector.extract_strided_slice %1 {offsets = [0, 88], sizes = [8, 8], strides = [1, 1]} : vector<8x96xbf16> to vector<8x8xbf16>
    %cst_17 = arith.constant dense<0.000000e+00> : vector<8x8xf32>
    %61 = tpu.matmul %58, %59, %cst_17 {dimension_numbers = #tpu.dot_dimension_numbers<[1], [1], [0], [0], [0, 0, 1, 0], [], []>} : vector<8x8xbf16>, vector<8x8xbf16>, vector<8x8xf32> -> vector<8x8xf32>
    %cst_18 = arith.constant dense<0xFF800000> : vector<8xf32>
    %62 = vector.multi_reduction <maximumf>, %61, %cst_18 [1] : vector<8x8xf32> to vector<8xf32>
    %63 = vector.shape_cast %62 : vector<8xf32> to vector<8x1xf32>
    %64 = vector.broadcast %63 : vector<8x1xf32> to vector<8x8xf32>
    %65 = arith.subf %61, %64 : vector<8x8xf32>
    %66 = math.exp %65 : vector<8x8xf32>
    %cst_19 = arith.constant dense<0.000000e+00> : vector<8xf32>
    %67 = vector.multi_reduction <add>, %66, %cst_19 [1] : vector<8x8xf32> to vector<8xf32>
    %68 = vector.shape_cast %67 : vector<8xf32> to vector<8x1xf32>
    %69 = tpu.reciprocal %68 {approx = true} : vector<8x1xf32> -> vector<8x1xf32>
    %70 = vector.broadcast %69 : vector<8x1xf32> to vector<8x8xf32>
    %71 = arith.mulf %66, %70 : vector<8x8xf32>
    %72 = arith.truncf %71 : vector<8x8xf32> to vector<8x8xbf16>
    %cst_20 = arith.constant dense<0.000000e+00> : vector<8x8xf32>
    %73 = tpu.matmul %72, %60, %cst_20 {dimension_numbers = #tpu.dot_dimension_numbers<[1], [0], [0], [1], [0, 0, 1, 1], [], []>} : vector<8x8xbf16>, vector<8x8xbf16>, vector<8x8xf32> -> vector<8x8xf32>
    %74 = tpu.concatenate %19, %37, %55, %73 in 1 : vector<8x8xf32>, vector<8x8xf32>, vector<8x8xf32>, vector<8x8xf32> -> vector<8x32xf32>
    %75 = arith.truncf %74 : vector<8x32xf32> to vector<8x32xbf16>
    %c0_21 = arith.constant 0 : index
    %c0_22 = arith.constant 0 : index
    %c0_23 = arith.constant 0 : index
    %76 = vector.load %arg2[%c0_21, %c0_22, %c0_23] : memref<1x8x32xbf16, #tpu.memory_space<vmem>>, vector<1x8x32xbf16>
    %77 = vector.shape_cast %76 : vector<1x8x32xbf16> to vector<8x32xbf16>
    %78 = vector.shape_cast %75 : vector<8x32xbf16> to vector<1x8x32xbf16>
    tpu.vector_store %arg2[%c0_21, %c0_22, %c0_23], %78 {strides = array<i32>} : memref<1x8x32xbf16, #tpu.memory_space<vmem>>, vector<1x8x32xbf16>,
    return
  }
  func.func @transform_0(%arg0: i32) -> (i32, i32, i32) {
    %c0_i32 = arith.constant 0 : i32
    %c0_i32_0 = arith.constant 0 : i32
    %c0_i32_1 = arith.constant 0 : i32
    return %arg0, %c0_i32, %c0_i32_0 : i32, i32, i32
  }
  func.func @transform_1(%arg0: i32) -> (i32, i32, i32) {
    %c0_i32 = arith.constant 0 : i32
    %c0_i32_0 = arith.constant 0 : i32
    %c0_i32_1 = arith.constant 0 : i32
    return %arg0, %c0_i32, %c0_i32_0 : i32, i32, i32
  }
}

module attributes {stable_mosaic.version = 11 : i64} {
  func.func @_linear_kernel(%arg0: i32, %arg1: i32, %arg2: i32, %arg3: memref<16x32xbf16, #tpu.memory_space<vmem>>, %arg4: memref<32x32xbf16, #tpu.memory_space<vmem>>, %arg5: memref<1x32xf32, #tpu.memory_space<vmem>>, %arg6: memref<16x32xbf16, #tpu.memory_space<vmem>>, %arg7: memref<16x32xf32, #tpu.memory_space<vmem>>) attributes {dimension_semantics = [#tpu.dimension_semantics<parallel>, #tpu.dimension_semantics<parallel>, #tpu.dimension_semantics<arbitrary>], iteration_bounds = array<i64: 1, 1, 1>, scalar_prefetch = 0 : i64, scratch_operands = 1 : i64, tpu.core_type = #tpu.core_type<tc>, window_params = [{transform_indices = @transform_0, window_bounds = array<i64: 16, 32>}, {transform_indices = @transform_1, window_bounds = array<i64: 32, 32>}, {transform_indices = @transform_2, window_bounds = array<i64: 1, 32>}, {transform_indices = @transform_3, window_bounds = array<i64: 16, 32>}]} {
    %c0_i32 = arith.constant 0 : i32
    %0 = arith.cmpi eq, %arg2, %c0_i32 : i32
    %1 = arith.extui %0 : i1 to i32
    %c0_i32_0 = arith.constant 0 : i32
    %2 = arith.cmpi ne, %1, %c0_i32_0 : i32
    scf.if %2 {
      %cst_10 = arith.constant 0.000000e+00 : f32
      %12 = vector.broadcast %cst_10 : f32 to vector<16x32xf32>
      %c0_11 = arith.constant 0 : index
      %c0_12 = arith.constant 0 : index
      %13 = vector.load %arg7[%c0_11, %c0_12] : memref<16x32xf32, #tpu.memory_space<vmem>>, vector<16x32xf32>
      tpu.vector_store %arg7[%c0_11, %c0_12], %12 {strides = array<i32>} : memref<16x32xf32, #tpu.memory_space<vmem>>, vector<16x32xf32>,
    } else {
    }
    %c0 = arith.constant 0 : index
    %c0_1 = arith.constant 0 : index
    %3 = vector.load %arg7[%c0, %c0_1] : memref<16x32xf32, #tpu.memory_space<vmem>>, vector<16x32xf32>
    %c0_2 = arith.constant 0 : index
    %c0_3 = arith.constant 0 : index
    %4 = vector.load %arg3[%c0_2, %c0_3] : memref<16x32xbf16, #tpu.memory_space<vmem>>, vector<16x32xbf16>
    %c0_4 = arith.constant 0 : index
    %c0_5 = arith.constant 0 : index
    %5 = vector.load %arg4[%c0_4, %c0_5] : memref<32x32xbf16, #tpu.memory_space<vmem>>, vector<32x32xbf16>
    %cst = arith.constant dense<0.000000e+00> : vector<16x32xf32>
    %6 = tpu.matmul %4, %5, %cst {dimension_numbers = #tpu.dot_dimension_numbers<[1], [0], [0], [1], [0, 0, 1, 1], [], []>} : vector<16x32xbf16>, vector<32x32xbf16>, vector<16x32xf32> -> vector<16x32xf32>
    %7 = arith.addf %3, %6 : vector<16x32xf32>
    %c0_6 = arith.constant 0 : index
    %c0_7 = arith.constant 0 : index
    %8 = vector.load %arg7[%c0_6, %c0_7] : memref<16x32xf32, #tpu.memory_space<vmem>>, vector<16x32xf32>
    tpu.vector_store %arg7[%c0_6, %c0_7], %7 {strides = array<i32>} : memref<16x32xf32, #tpu.memory_space<vmem>>, vector<16x32xf32>,
    %c0_i32_8 = arith.constant 0 : i32
    %9 = arith.cmpi eq, %arg2, %c0_i32_8 : i32
    %10 = arith.extui %9 : i1 to i32
    %c0_i32_9 = arith.constant 0 : i32
    %11 = arith.cmpi ne, %10, %c0_i32_9 : i32
    scf.if %11 {
      %c0_10 = arith.constant 0 : index
      %c0_11 = arith.constant 0 : index
      %12 = vector.load %arg7[%c0_10, %c0_11] : memref<16x32xf32, #tpu.memory_space<vmem>>, vector<16x32xf32>
      %c0_12 = arith.constant 0 : index
      %c0_13 = arith.constant 0 : index
      %13 = vector.load %arg5[%c0_12, %c0_13] : memref<1x32xf32, #tpu.memory_space<vmem>>, vector<1x32xf32>
      %14 = vector.broadcast %13 : vector<1x32xf32> to vector<16x32xf32>
      %15 = arith.addf %12, %14 : vector<16x32xf32>
      %16 = arith.truncf %15 : vector<16x32xf32> to vector<16x32xbf16>
      %c0_14 = arith.constant 0 : index
      %c0_15 = arith.constant 0 : index
      %17 = vector.load %arg6[%c0_14, %c0_15] : memref<16x32xbf16, #tpu.memory_space<vmem>>, vector<16x32xbf16>
      tpu.vector_store %arg6[%c0_14, %c0_15], %16 {strides = array<i32>} : memref<16x32xbf16, #tpu.memory_space<vmem>>, vector<16x32xbf16>,
    } else {
    }
    return
  }
  func.func @transform_0(%arg0: i32, %arg1: i32, %arg2: i32) -> (i32, i32) {
    %c0_i32 = arith.constant 0 : i32
    return %arg0, %arg2 : i32, i32
  }
  func.func @transform_1(%arg0: i32, %arg1: i32, %arg2: i32) -> (i32, i32) {
    %c0_i32 = arith.constant 0 : i32
    return %arg2, %arg1 : i32, i32
  }
  func.func @transform_2(%arg0: i32, %arg1: i32, %arg2: i32) -> (i32, i32) {
    %c0_i32 = arith.constant 0 : i32
    %c0_i32_0 = arith.constant 0 : i32
    return %c0_i32, %arg1 : i32, i32
  }
  func.func @transform_3(%arg0: i32, %arg1: i32, %arg2: i32) -> (i32, i32) {
    %c0_i32 = arith.constant 0 : i32
    return %arg0, %arg1 : i32, i32
  }
}

module attributes {stable_mosaic.version = 11 : i64} {
  func.func @_linear_kernel(%arg0: i32, %arg1: i32, %arg2: i32, %arg3: memref<16x32xbf16, #tpu.memory_space<vmem>>, %arg4: memref<32x64xbf16, #tpu.memory_space<vmem>>, %arg5: memref<1x64xf32, #tpu.memory_space<vmem>>, %arg6: memref<16x64xbf16, #tpu.memory_space<vmem>>, %arg7: memref<16x64xf32, #tpu.memory_space<vmem>>) attributes {dimension_semantics = [#tpu.dimension_semantics<parallel>, #tpu.dimension_semantics<parallel>, #tpu.dimension_semantics<arbitrary>], iteration_bounds = array<i64: 1, 1, 1>, scalar_prefetch = 0 : i64, scratch_operands = 1 : i64, tpu.core_type = #tpu.core_type<tc>, window_params = [{transform_indices = @transform_0, window_bounds = array<i64: 16, 32>}, {transform_indices = @transform_1, window_bounds = array<i64: 32, 64>}, {transform_indices = @transform_2, window_bounds = array<i64: 1, 64>}, {transform_indices = @transform_3, window_bounds = array<i64: 16, 64>}]} {
    %c0_i32 = arith.constant 0 : i32
    %0 = arith.cmpi eq, %arg2, %c0_i32 : i32
    %1 = arith.extui %0 : i1 to i32
    %c0_i32_0 = arith.constant 0 : i32
    %2 = arith.cmpi ne, %1, %c0_i32_0 : i32
    scf.if %2 {
      %cst_10 = arith.constant 0.000000e+00 : f32
      %12 = vector.broadcast %cst_10 : f32 to vector<16x64xf32>
      %c0_11 = arith.constant 0 : index
      %c0_12 = arith.constant 0 : index
      %13 = vector.load %arg7[%c0_11, %c0_12] : memref<16x64xf32, #tpu.memory_space<vmem>>, vector<16x64xf32>
      tpu.vector_store %arg7[%c0_11, %c0_12], %12 {strides = array<i32>} : memref<16x64xf32, #tpu.memory_space<vmem>>, vector<16x64xf32>,
    } else {
    }
    %c0 = arith.constant 0 : index
    %c0_1 = arith.constant 0 : index
    %3 = vector.load %arg7[%c0, %c0_1] : memref<16x64xf32, #tpu.memory_space<vmem>>, vector<16x64xf32>
    %c0_2 = arith.constant 0 : index
    %c0_3 = arith.constant 0 : index
    %4 = vector.load %arg3[%c0_2, %c0_3] : memref<16x32xbf16, #tpu.memory_space<vmem>>, vector<16x32xbf16>
    %c0_4 = arith.constant 0 : index
    %c0_5 = arith.constant 0 : index
    %5 = vector.load %arg4[%c0_4, %c0_5] : memref<32x64xbf16, #tpu.memory_space<vmem>>, vector<32x64xbf16>
    %cst = arith.constant dense<0.000000e+00> : vector<16x64xf32>
    %6 = tpu.matmul %4, %5, %cst {dimension_numbers = #tpu.dot_dimension_numbers<[1], [0], [0], [1], [0, 0, 1, 1], [], []>} : vector<16x32xbf16>, vector<32x64xbf16>, vector<16x64xf32> -> vector<16x64xf32>
    %7 = arith.addf %3, %6 : vector<16x64xf32>
    %c0_6 = arith.constant 0 : index
    %c0_7 = arith.constant 0 : index
    %8 = vector.load %arg7[%c0_6, %c0_7] : memref<16x64xf32, #tpu.memory_space<vmem>>, vector<16x64xf32>
    tpu.vector_store %arg7[%c0_6, %c0_7], %7 {strides = array<i32>} : memref<16x64xf32, #tpu.memory_space<vmem>>, vector<16x64xf32>,
    %c0_i32_8 = arith.constant 0 : i32
    %9 = arith.cmpi eq, %arg2, %c0_i32_8 : i32
    %10 = arith.extui %9 : i1 to i32
    %c0_i32_9 = arith.constant 0 : i32
    %11 = arith.cmpi ne, %10, %c0_i32_9 : i32
    scf.if %11 {
      %c0_10 = arith.constant 0 : index
      %c0_11 = arith.constant 0 : index
      %12 = vector.load %arg7[%c0_10, %c0_11] : memref<16x64xf32, #tpu.memory_space<vmem>>, vector<16x64xf32>
      %c0_12 = arith.constant 0 : index
      %c0_13 = arith.constant 0 : index
      %13 = vector.load %arg5[%c0_12, %c0_13] : memref<1x64xf32, #tpu.memory_space<vmem>>, vector<1x64xf32>
      %14 = vector.broadcast %13 : vector<1x64xf32> to vector<16x64xf32>
      %15 = arith.addf %12, %14 : vector<16x64xf32>
      %cst_14 = arith.constant 5.000000e-01 : f32
      %16 = vector.broadcast %cst_14 : f32 to vector<16x64xf32>
      %17 = arith.mulf %16, %15 : vector<16x64xf32>
      %cst_15 = arith.constant 0.707106769 : f32
      %18 = vector.broadcast %cst_15 : f32 to vector<16x64xf32>
      %19 = arith.mulf %15, %18 : vector<16x64xf32>
      %20 = math.erf %19 : vector<16x64xf32>
      %cst_16 = arith.constant 1.000000e+00 : f32
      %21 = vector.broadcast %cst_16 : f32 to vector<16x64xf32>
      %22 = arith.addf %21, %20 : vector<16x64xf32>
      %23 = arith.mulf %17, %22 : vector<16x64xf32>
      %24 = arith.truncf %23 : vector<16x64xf32> to vector<16x64xbf16>
      %c0_17 = arith.constant 0 : index
      %c0_18 = arith.constant 0 : index
      %25 = vector.load %arg6[%c0_17, %c0_18] : memref<16x64xbf16, #tpu.memory_space<vmem>>, vector<16x64xbf16>
      tpu.vector_store %arg6[%c0_17, %c0_18], %24 {strides = array<i32>} : memref<16x64xbf16, #tpu.memory_space<vmem>>, vector<16x64xbf16>,
    } else {
    }
    return
  }
  func.func @transform_0(%arg0: i32, %arg1: i32, %arg2: i32) -> (i32, i32) {
    %c0_i32 = arith.constant 0 : i32
    return %arg0, %arg2 : i32, i32
  }
  func.func @transform_1(%arg0: i32, %arg1: i32, %arg2: i32) -> (i32, i32) {
    %c0_i32 = arith.constant 0 : i32
    return %arg2, %arg1 : i32, i32
  }
  func.func @transform_2(%arg0: i32, %arg1: i32, %arg2: i32) -> (i32, i32) {
    %c0_i32 = arith.constant 0 : i32
    %c0_i32_0 = arith.constant 0 : i32
    return %c0_i32, %arg1 : i32, i32
  }
  func.func @transform_3(%arg0: i32, %arg1: i32, %arg2: i32) -> (i32, i32) {
    %c0_i32 = arith.constant 0 : i32
    return %arg0, %arg1 : i32, i32
  }
}

module attributes {stable_mosaic.version = 11 : i64} {
  func.func @_add_layernorm_kernel(%arg0: i32, %arg1: memref<16x32xbf16, #tpu.memory_space<vmem>>, %arg2: memref<16x32xbf16, #tpu.memory_space<vmem>>, %arg3: memref<1x32xf32, #tpu.memory_space<vmem>>, %arg4: memref<1x32xf32, #tpu.memory_space<vmem>>, %arg5: memref<16x32xbf16, #tpu.memory_space<vmem>>) attributes {dimension_semantics = [#tpu.dimension_semantics<parallel>], iteration_bounds = array<i64: 1>, scalar_prefetch = 0 : i64, scratch_operands = 0 : i64, tpu.core_type = #tpu.core_type<tc>, window_params = [{transform_indices = @transform_0, window_bounds = array<i64: 16, 32>}, {transform_indices = @transform_1, window_bounds = array<i64: 16, 32>}, {pipeline_mode = #tpu.pipeline_mode<synchronous>, transform_indices = @transform_2, window_bounds = array<i64: 1, 32>}, {pipeline_mode = #tpu.pipeline_mode<synchronous>, transform_indices = @transform_3, window_bounds = array<i64: 1, 32>}, {transform_indices = @transform_4, window_bounds = array<i64: 16, 32>}]} {
    %c0 = arith.constant 0 : index
    %c0_0 = arith.constant 0 : index
    %0 = vector.load %arg1[%c0, %c0_0] : memref<16x32xbf16, #tpu.memory_space<vmem>>, vector<16x32xbf16>
    %1 = arith.extf %0 : vector<16x32xbf16> to vector<16x32xf32>
    %c0_1 = arith.constant 0 : index
    %c0_2 = arith.constant 0 : index
    %2 = vector.load %arg2[%c0_1, %c0_2] : memref<16x32xbf16, #tpu.memory_space<vmem>>, vector<16x32xbf16>
    %3 = arith.extf %2 : vector<16x32xbf16> to vector<16x32xf32>
    %4 = arith.addf %1, %3 : vector<16x32xf32>
    %cst = arith.constant dense<0.000000e+00> : vector<16xf32>
    %5 = vector.multi_reduction <add>, %4, %cst [1] : vector<16x32xf32> to vector<16xf32>
    %6 = vector.shape_cast %5 : vector<16xf32> to vector<16x1xf32>
    %cst_3 = arith.constant 3.200000e+01 : f32
    %7 = vector.broadcast %cst_3 : f32 to vector<16x1xf32>
    %8 = arith.divf %6, %7 : vector<16x1xf32>
    %9 = vector.broadcast %8 : vector<16x1xf32> to vector<16x32xf32>
    %10 = arith.subf %4, %9 : vector<16x32xf32>
    %11 = arith.mulf %10, %10 : vector<16x32xf32>
    %cst_4 = arith.constant dense<0.000000e+00> : vector<16xf32>
    %12 = vector.multi_reduction <add>, %11, %cst_4 [1] : vector<16x32xf32> to vector<16xf32>
    %13 = vector.shape_cast %12 : vector<16xf32> to vector<16x1xf32>
    %cst_5 = arith.constant 3.200000e+01 : f32
    %14 = vector.broadcast %cst_5 : f32 to vector<16x1xf32>
    %15 = arith.divf %13, %14 : vector<16x1xf32>
    %cst_6 = arith.constant 9.99999996E-13 : f32
    %16 = vector.broadcast %cst_6 : f32 to vector<16x1xf32>
    %17 = arith.addf %15, %16 : vector<16x1xf32>
    %18 = math.rsqrt %17 : vector<16x1xf32>
    %19 = vector.broadcast %18 : vector<16x1xf32> to vector<16x32xf32>
    %20 = arith.mulf %10, %19 : vector<16x32xf32>
    %c0_7 = arith.constant 0 : index
    %c0_8 = arith.constant 0 : index
    %21 = vector.load %arg3[%c0_7, %c0_8] : memref<1x32xf32, #tpu.memory_space<vmem>>, vector<1x32xf32>
    %22 = vector.broadcast %21 : vector<1x32xf32> to vector<16x32xf32>
    %23 = arith.mulf %20, %22 : vector<16x32xf32>
    %c0_9 = arith.constant 0 : index
    %c0_10 = arith.constant 0 : index
    %24 = vector.load %arg4[%c0_9, %c0_10] : memref<1x32xf32, #tpu.memory_space<vmem>>, vector<1x32xf32>
    %25 = vector.broadcast %24 : vector<1x32xf32> to vector<16x32xf32>
    %26 = arith.addf %23, %25 : vector<16x32xf32>
    %27 = arith.truncf %26 : vector<16x32xf32> to vector<16x32xbf16>
    %c0_11 = arith.constant 0 : index
    %c0_12 = arith.constant 0 : index
    %28 = vector.load %arg5[%c0_11, %c0_12] : memref<16x32xbf16, #tpu.memory_space<vmem>>, vector<16x32xbf16>
    tpu.vector_store %arg5[%c0_11, %c0_12], %27 {strides = array<i32>} : memref<16x32xbf16, #tpu.memory_space<vmem>>, vector<16x32xbf16>,
    return
  }
  func.func @transform_0(%arg0: i32) -> (i32, i32) {
    %c0_i32 = arith.constant 0 : i32
    %c0_i32_0 = arith.constant 0 : i32
    return %arg0, %c0_i32 : i32, i32
  }
  func.func @transform_1(%arg0: i32) -> (i32, i32) {
    %c0_i32 = arith.constant 0 : i32
    %c0_i32_0 = arith.constant 0 : i32
    return %arg0, %c0_i32 : i32, i32
  }
  func.func @transform_2(%arg0: i32) -> (i32, i32) {
    %c0_i32 = arith.constant 0 : i32
    %c0_i32_0 = arith.constant 0 : i32
    %c0_i32_1 = arith.constant 0 : i32
    return %c0_i32, %c0_i32_0 : i32, i32
  }
  func.func @transform_3(%arg0: i32) -> (i32, i32) {
    %c0_i32 = arith.constant 0 : i32
    %c0_i32_0 = arith.constant 0 : i32
    %c0_i32_1 = arith.constant 0 : i32
    return %c0_i32, %c0_i32_0 : i32, i32
  }
  func.func @transform_4(%arg0: i32) -> (i32, i32) {
    %c0_i32 = arith.constant 0 : i32
    %c0_i32_0 = arith.constant 0 : i32
    return %arg0, %c0_i32 : i32, i32
  }
}

module attributes {stable_mosaic.version = 11 : i64} {
  func.func @_linear_kernel(%arg0: i32, %arg1: i32, %arg2: i32, %arg3: memref<16x64xbf16, #tpu.memory_space<vmem>>, %arg4: memref<64x32xbf16, #tpu.memory_space<vmem>>, %arg5: memref<1x32xf32, #tpu.memory_space<vmem>>, %arg6: memref<16x32xbf16, #tpu.memory_space<vmem>>, %arg7: memref<16x32xf32, #tpu.memory_space<vmem>>) attributes {dimension_semantics = [#tpu.dimension_semantics<parallel>, #tpu.dimension_semantics<parallel>, #tpu.dimension_semantics<arbitrary>], iteration_bounds = array<i64: 1, 1, 1>, scalar_prefetch = 0 : i64, scratch_operands = 1 : i64, tpu.core_type = #tpu.core_type<tc>, window_params = [{transform_indices = @transform_0, window_bounds = array<i64: 16, 64>}, {transform_indices = @transform_1, window_bounds = array<i64: 64, 32>}, {transform_indices = @transform_2, window_bounds = array<i64: 1, 32>}, {transform_indices = @transform_3, window_bounds = array<i64: 16, 32>}]} {
    %c0_i32 = arith.constant 0 : i32
    %0 = arith.cmpi eq, %arg2, %c0_i32 : i32
    %1 = arith.extui %0 : i1 to i32
    %c0_i32_0 = arith.constant 0 : i32
    %2 = arith.cmpi ne, %1, %c0_i32_0 : i32
    scf.if %2 {
      %cst_10 = arith.constant 0.000000e+00 : f32
      %12 = vector.broadcast %cst_10 : f32 to vector<16x32xf32>
      %c0_11 = arith.constant 0 : index
      %c0_12 = arith.constant 0 : index
      %13 = vector.load %arg7[%c0_11, %c0_12] : memref<16x32xf32, #tpu.memory_space<vmem>>, vector<16x32xf32>
      tpu.vector_store %arg7[%c0_11, %c0_12], %12 {strides = array<i32>} : memref<16x32xf32, #tpu.memory_space<vmem>>, vector<16x32xf32>,
    } else {
    }
    %c0 = arith.constant 0 : index
    %c0_1 = arith.constant 0 : index
    %3 = vector.load %arg7[%c0, %c0_1] : memref<16x32xf32, #tpu.memory_space<vmem>>, vector<16x32xf32>
    %c0_2 = arith.constant 0 : index
    %c0_3 = arith.constant 0 : index
    %4 = vector.load %arg3[%c0_2, %c0_3] : memref<16x64xbf16, #tpu.memory_space<vmem>>, vector<16x64xbf16>
    %c0_4 = arith.constant 0 : index
    %c0_5 = arith.constant 0 : index
    %5 = vector.load %arg4[%c0_4, %c0_5] : memref<64x32xbf16, #tpu.memory_space<vmem>>, vector<64x32xbf16>
    %cst = arith.constant dense<0.000000e+00> : vector<16x32xf32>
    %6 = tpu.matmul %4, %5, %cst {dimension_numbers = #tpu.dot_dimension_numbers<[1], [0], [0], [1], [0, 0, 1, 1], [], []>} : vector<16x64xbf16>, vector<64x32xbf16>, vector<16x32xf32> -> vector<16x32xf32>
    %7 = arith.addf %3, %6 : vector<16x32xf32>
    %c0_6 = arith.constant 0 : index
    %c0_7 = arith.constant 0 : index
    %8 = vector.load %arg7[%c0_6, %c0_7] : memref<16x32xf32, #tpu.memory_space<vmem>>, vector<16x32xf32>
    tpu.vector_store %arg7[%c0_6, %c0_7], %7 {strides = array<i32>} : memref<16x32xf32, #tpu.memory_space<vmem>>, vector<16x32xf32>,
    %c0_i32_8 = arith.constant 0 : i32
    %9 = arith.cmpi eq, %arg2, %c0_i32_8 : i32
    %10 = arith.extui %9 : i1 to i32
    %c0_i32_9 = arith.constant 0 : i32
    %11 = arith.cmpi ne, %10, %c0_i32_9 : i32
    scf.if %11 {
      %c0_10 = arith.constant 0 : index
      %c0_11 = arith.constant 0 : index
      %12 = vector.load %arg7[%c0_10, %c0_11] : memref<16x32xf32, #tpu.memory_space<vmem>>, vector<16x32xf32>
      %c0_12 = arith.constant 0 : index
      %c0_13 = arith.constant 0 : index
      %13 = vector.load %arg5[%c0_12, %c0_13] : memref<1x32xf32, #tpu.memory_space<vmem>>, vector<1x32xf32>
      %14 = vector.broadcast %13 : vector<1x32xf32> to vector<16x32xf32>
      %15 = arith.addf %12, %14 : vector<16x32xf32>
      %16 = arith.truncf %15 : vector<16x32xf32> to vector<16x32xbf16>
      %c0_14 = arith.constant 0 : index
      %c0_15 = arith.constant 0 : index
      %17 = vector.load %arg6[%c0_14, %c0_15] : memref<16x32xbf16, #tpu.memory_space<vmem>>, vector<16x32xbf16>
      tpu.vector_store %arg6[%c0_14, %c0_15], %16 {strides = array<i32>} : memref<16x32xbf16, #tpu.memory_space<vmem>>, vector<16x32xbf16>,
    } else {
    }
    return
  }
  func.func @transform_0(%arg0: i32, %arg1: i32, %arg2: i32) -> (i32, i32) {
    %c0_i32 = arith.constant 0 : i32
    return %arg0, %arg2 : i32, i32
  }
  func.func @transform_1(%arg0: i32, %arg1: i32, %arg2: i32) -> (i32, i32) {
    %c0_i32 = arith.constant 0 : i32
    return %arg2, %arg1 : i32, i32
  }
  func.func @transform_2(%arg0: i32, %arg1: i32, %arg2: i32) -> (i32, i32) {
    %c0_i32 = arith.constant 0 : i32
    %c0_i32_0 = arith.constant 0 : i32
    return %c0_i32, %arg1 : i32, i32
  }
  func.func @transform_3(%arg0: i32, %arg1: i32, %arg2: i32) -> (i32, i32) {
    %c0_i32 = arith.constant 0 : i32
    return %arg0, %arg1 : i32, i32
  }
}

</mosaic_0001>

<bundles_post_ra>
// kernel: bert_forward.18
= control target key start
LH: loop header
LB: loop body
LE: loop exit
PB: predicated region body
PF: predicated region fallthrough
CT: control target
= control target key end

     0   :  { %vm19_vm0 = vcmask 261120   ;;  %v150_v0 = vmov 0.0   ;;  %vm151_vm1 = vmmov 0   ;;  %vm118_vm2 = vcmask 257024   ;;  %s195_s1 = inlined_call_operand.vmem [shape: bf16[32,32], index: 1, kind: input, shape index: {}]   ;;  %s196_s0 = inlined_call_operand.vmem [shape: bf16[16,32], index: 0, kind: input, shape index: {}]   ;;  %s197_s2 = inlined_call_operand.vmem [shape: f32[1,32], index: 2, kind: input, shape index: {}]   ;;  %s198_s3 = inlined_call_operand.vmem [shape: bf16[16,32], index: 3, kind: output, shape index: {}]  }
   0x1   :  { %137 = vmatprep.subr.bf16.mxu0 %v150_v0  ;;  %v147_v1 = vld [vmem:[%s195_s1 + $0x8] sm:$0xff]   ;;  %141 = vmatprep.mubr.msk.bf16.mxu0 %vm151_vm1, %v150_v0  ;;  %20 = vst.msk [vmem:[#allocation2] sm:$0xff] %vm19_vm0, %v150_v0  ;;  %21 = vst.msk [vmem:[#allocation2 + $0x8] sm:$0xff] %vm19_vm0, %v150_v0  ;;  %v148_v2 = vld [vmem:[%s195_s1] sm:$0xff]  }
   0x2   :  { %138 = vmatpush3.bf16.msra.mxu0 %v147_v1  ;;  %v149_v3 = vld [vmem:[%s196_s0] sm:$0xff]  }
   0x3   :  { %139 = vmatprep.subr.bf16.mxu0 %v150_v0  ;;  %v129_v12 = vld [vmem:[%s197_s2] ss:$0 sm:$0xff] }
   0x6   :  { %140 = vmatpush3.bf16.msra.mxu0 %v148_v2 }
   0x8   :  { %v22_v4 = vld [vmem:[#allocation2] sm:$0xff]  ;;  %v23_v8 = vld [vmem:[#allocation2 + $0x8] sm:$0xff] }
   0x9   :  { %142 = vmatmul.mubr.msk.bf16.vlgmr.msra.gmra.mxu0 %vm19_vm0, %v149_v3 }
  0xc9   :  { %v85_v5 = vpop.f32.mrf.mxu0 }
  0xca   :  { %v92_v6 = vadd.f32 %v85_v5, %v22_v4 }
  0xcb   :  { %v143_v7 = vpop.f32.mrf.mxu0 }
  0xcc   :  { %94 = vst.msk [vmem:[#allocation2] sm:$0xff] %vm19_vm0, %v92_v6 }
  0xcd   :  { %v88_v9 = vpop.f32.mrf.mxu0 }
  0xce   :  { %v93_v10 = vadd.f32 %v88_v9, %v23_v8 }
  0xcf   :  { %v144_v11 = vpop.f32.mrf.mxu0 }
  0xd0   :  { %95 = vst.msk [vmem:[#allocation2 + $0x8] sm:$0xff] %vm19_vm0, %v93_v10 }
  0xd3   :  { %v99_v13 = vld [vmem:[#allocation2] sm:$0xff] }
  0xd4   :  { %v108_v14 = vadd.f32 %v129_v12, %v99_v13 }
  0xd6   :  { %v132_v15 = vpack.c.bf16 %v108_v14, %v108_v14 }
  0xd7   :  { %v100_v16 = vld [vmem:[#allocation2 + $0x8] sm:$0xff] }
  0xd8   :  { %119 = vst.msk [vmem:[%s198_s3] sm:$0xf] %vm118_vm2, %v132_v15  ;;  %v109_v17 = vadd.f32 %v129_v12, %v100_v16 }
  0xda   :  { %v133_v18 = vpack.c.bf16 %v109_v17, %v109_v17 }
  0xdc   :  { %120 = vst.msk [vmem:[%s198_s3 + $0x4] sm:$0xf] %vm118_vm2, %v133_v18 }

// kernel: bert_forward.16
= control target key start
LH: loop header
LB: loop body
LE: loop exit
PB: predicated region body
PF: predicated region fallthrough
CT: control target
= control target key end

     0   :  { %vm19_vm0 = vcmask 785408   ;;  %v151_v0 = vmov 0.0   ;;  %vm152_vm1 = vmmov 0   ;;  %vm47_vm2 = vcmask 261120   ;;  %s195_s1 = inlined_call_operand.vmem [shape: bf16[32,96], index: 1, kind: input, shape index: {}]   ;;  %s196_s0 = inlined_call_operand.vmem [shape: bf16[16,32], index: 0, kind: input, shape index: {}]   ;;  %s197_s2 = inlined_call_operand.vmem [shape: f32[1,96], index: 2, kind: input, shape index: {}]   ;;  %s198_s3 = inlined_call_operand.vmem [shape: bf16[16,96], index: 3, kind: output, shape index: {}]  }
   0x1   :  { %138 = vmatprep.subr.bf16.mxu0 %v151_v0  ;;  %v148_v1 = vld [vmem:[%s195_s1 + $0x8] sm:$0xff]   ;;  %142 = vmatprep.mubr.msk.bf16.mxu0 %vm152_vm1, %v151_v0  ;;  %20 = vst.msk [vmem:[#allocation2] sm:$0xff] %vm19_vm0, %v151_v0  ;;  %21 = vst.msk [vmem:[#allocation2 + $0x8] sm:$0xff] %vm19_vm0, %v151_v0  ;;  %v149_v2 = vld [vmem:[%s195_s1] sm:$0xff]   ;;  %vm119_vm3 = vcmask 781312  }
   0x2   :  { %139 = vmatpush3.bf16.msra.mxu0 %v148_v1  ;;  %v150_v3 = vld [vmem:[%s196_s0] sm:$0xff]  }
   0x3   :  { %140 = vmatprep.subr.bf16.mxu0 %v151_v0  ;;  %v130_v12 = vld [vmem:[%s197_s2] ss:$0 sm:$0xff] }
   0x6   :  { %141 = vmatpush3.bf16.msra.mxu0 %v149_v2 }
   0x8   :  { %v22_v4 = vld [vmem:[#allocation2] sm:$0xff]  ;;  %v23_v8 = vld [vmem:[#allocation2 + $0x8] sm:$0xff] }
   0x9   :  { %143 = vmatmul.mubr.msk.bf16.vlgmr.msra.gmra.mxu0 %vm47_vm2, %v150_v3 }
  0xc9   :  { %v85_v5 = vpop.f32.mrf.mxu0 }
  0xca   :  { %v92_v6 = vadd.f32 %v85_v5, %v22_v4 }
  0xcb   :  { %v144_v7 = vpop.f32.mrf.mxu0 }
  0xcc   :  { %95 = vst.msk [vmem:[#allocation2] sm:$0xff] %vm19_vm0, %v92_v6 }
  0xcd   :  { %v88_v9 = vpop.f32.mrf.mxu0 }
  0xce   :  { %v93_v10 = vadd.f32 %v88_v9, %v23_v8 }
  0xcf   :  { %v145_v11 = vpop.f32.mrf.mxu0 }
  0xd0   :  { %96 = vst.msk [vmem:[#allocation2 + $0x8] sm:$0xff] %vm19_vm0, %v93_v10 }
  0xd3   :  { %v100_v13 = vld [vmem:[#allocation2] sm:$0xff] }
  0xd4   :  { %v109_v14 = vadd.f32 %v130_v12, %v100_v13 }
  0xd6   :  { %v133_v15 = vpack.c.bf16 %v109_v14, %v109_v14 }
  0xd7   :  { %v101_v16 = vld [vmem:[#allocation2 + $0x8] sm:$0xff] }
  0xd8   :  { %120 = vst.msk [vmem:[%s198_s3] sm:$0xf] %vm119_vm3, %v133_v15  ;;  %v110_v17 = vadd.f32 %v130_v12, %v101_v16 }
  0xda   :  { %v134_v18 = vpack.c.bf16 %v110_v17, %v110_v17 }
  0xdc   :  { %121 = vst.msk [vmem:[%s198_s3 + $0x4] sm:$0xf] %vm119_vm3, %v134_v18 }

// kernel: bert_forward.15
= control target key start
LH: loop header
LB: loop body
LE: loop exit
PB: predicated region body
PF: predicated region fallthrough
CT: control target
= control target key end

     0   :  { %vm16_vm0 = vcmask 261120   ;;  %vm70_vm1 = vcmask 257024   ;;  %s129_s0 = inlined_call_operand.vmem [shape: f32[16,32], index: 0, kind: input, shape index: {}]   ;;  %s130_s1 = inlined_call_operand.vmem [shape: f32[1,32], index: 1, kind: input, shape index: {}]   ;;  %s131_s2 = inlined_call_operand.vmem [shape: f32[1,32], index: 2, kind: input, shape index: {}]   ;;  %s132_s3 = inlined_call_operand.vmem [shape: bf16[16,32], index: 3, kind: output, shape index: {}]  }
   0x1   :  { %v14_v0 = vld [vmem:[%s129_s0] sm:$0xff]  ;;  %v15_v1 = vld [vmem:[%s129_s0 + $0x8] sm:$0xff] }
   0x2   :  { %v17_v2 = vsel %vm16_vm0, %v14_v0, 0.0  ;;  %v20_v3 = vsel %vm16_vm0, %v15_v1, 0.0  ;;  %v77_v21 = vld [vmem:[%s130_s1] ss:$0 sm:$0xff] }
   0x3   :  { %18 = vadd.xlane.f32.xlu0 %v17_v2  ;;  %v78_v23 = vld [vmem:[%s131_s2] ss:$0 sm:$0xff] }
   0x7   :  { %21 = vadd.xlane.f32.xlu0 %v20_v3 }
  0x8c   :  { %v19_v4 = vpop.xlane.xlu0 %18 }
  0x8d   :  { %v24_v5 = vmul.f32 0.03125, %v19_v4 }
  0x8f   :  { %v26_v6 = vsub.f32 %v14_v0, %v24_v5 }
  0x90   :  { %v22_v7 = vpop.xlane.xlu0 %21 }
  0x91   :  { %v25_v8 = vmul.f32 0.03125, %v22_v7  ;;  %v28_v9 = vmul.f32 %v26_v6, %v26_v6 }
  0x93   :  { %v27_v10 = vsub.f32 %v15_v1, %v25_v8  ;;  %v30_v11 = vsel %vm16_vm0, %v28_v9, 0.0 }
  0x94   :  { %31 = vadd.xlane.f32.xlu1 %v30_v11 }
  0x95   :  { %v29_v12 = vmul.f32 %v27_v10, %v27_v10 }
  0x97   :  { %v33_v13 = vsel %vm16_vm0, %v29_v12, 0.0 }
  0x98   :  { %34 = vadd.xlane.f32.xlu1 %v33_v13 }
 0x11d   :  { %v32_v14 = vpop.xlane.xlu1 %31 }
 0x11e   :  { %v36_v15 = vmul.f32 0.03125, %v32_v14 }
 0x120   :  { %v38_v16 = vadd.f32 1e-12, %v36_v15 }
 0x121   :  { %v35_v17 = vpop.xlane.xlu1 %34 }
 0x122   :  { %83 = vrsqrt.f32 %v38_v16  ;;  %v37_v18 = vmul.f32 0.03125, %v35_v17 }
 0x124   :  { %v39_v19 = vadd.f32 1e-12, %v37_v18 }
 0x126   :  { %85 = vrsqrt.f32 %v39_v19 }
 0x12f   :  { %v84_v20 = vpop.eup %83 }
 0x130   :  { %v42_v22 = vmul.f32 %v84_v20, %v26_v6 }
 0x132   :  { %v51_v24 = vmul.f32 %v77_v21, %v42_v22 }
 0x133   :  { %v86_v25 = vpop.eup %85 }
 0x134   :  { %v60_v26 = vadd.f32 %v78_v23, %v51_v24  ;;  %v43_v27 = vmul.f32 %v86_v25, %v27_v10 }
 0x136   :  { %v81_v28 = vpack.c.bf16 %v60_v26, %v60_v26  ;;  %v52_v29 = vmul.f32 %v77_v21, %v43_v27 }
 0x138   :  { %71 = vst.msk [vmem:[%s132_s3] sm:$0xf] %vm70_vm1, %v81_v28  ;;  %v61_v30 = vadd.f32 %v78_v23, %v52_v29 }
 0x13a   :  { %v82_v31 = vpack.c.bf16 %v61_v30, %v61_v30 }
 0x13c   :  { %72 = vst.msk [vmem:[%s132_s3 + $0x4] sm:$0xf] %vm70_vm1, %v82_v31 }

// kernel: bert_forward.17
= control target key start
LH: loop header
LB: loop body
LE: loop exit
PB: predicated region body
PF: predicated region fallthrough
CT: control target
= control target key end

     0   :  { %s793_s6 = smov 0   ;;  %s879_s0 = inlined_call_operand.vmem [shape: bf16[2,8,96], index: 0, kind: input, shape index: {}]   ;;  %s880_s1 = inlined_call_operand.vmem [shape: bf16[2,8,32], index: 1, kind: output, shape index: {}]  }
   0x1 LB: > { %s635_s7 = sadd.s32 4294967295, %s765_s6   ;;  %p639_p0 = scmp.ge.s32.totalorder %s765_s6, 1  ;;  %s765_s6 = sphi %s793_s6, %s11_s6  }
   0x2   : > { %p86_p1 = scmp.lt.s32.totalorder %s765_s6, 3 }
   0x4   : > { %p87_p2 = pnand %p639_p0, %p86_p1 }
   0x5   : > { %p104_p3 = scmp.lt.s32.totalorder (!%p87_p2), %s635_s7, 1  ;;  %s769_s12 = smov (!%p87_p2), 96  }
   0x6   : > { %90 = sbr.rel (%p87_p2) target bundleno = 1535 (0x5ff), region = 24  ;;  %s770_s13 = smov (!%p87_p2), 64  }
   0x7   : > { %s771_s14 = smov (!%p87_p2), 88   ;;  %s772_s15 = smov (!%p87_p2), 72  }
   0x8   : > { %s773_s16 = smov (!%p87_p2), 120   ;;  %s774_s17 = smov (!%p87_p2), 80  }
   0x9   : > { %s775_s18 = smov (!%p87_p2), 112   ;;  %s776_s19 = smov (!%p87_p2), 104  }
   0xa   : > { %s777_s20 = smov (!%p87_p2), 56   ;;  %s778_s21 = smov (!%p87_p2), 48  }
   0xb   : > { %v767_v0 = vmov 0.0   ;;  %vm768_vm0 = vmmov 0   ;;  %s882_s7 = smov (!%p104_p3, %s635_s7), 1  ;;  %vm121_vm1 = vcmask 64512   ;;  %vm185_vm2 = vcmask 1043456   ;;  %s779_s22 = smov 40  }
   0xc   : > { %670 = vmatprep.subr.bf16.mxu0 %v767_v0  ;;  %672 = vmatprep.mubr.msk.bf16.mxu0 %vm768_vm0, %v767_v0  ;;  %s640_s8 = sshll.u32 %s882_s7, 2  ;;  %s780_s23 = smov 8   ;;  %vm575_vm3 = vcmask 130048   ;;  %vm577_vm4 = vcmask 195584   ;;  %vm580_vm5 = vcmask 257024  }
   0xd   : > { %676 = vmatprep.subr.bf16.mxu1 %v767_v0  ;;  %678 = vmatprep.mubr.msk.bf16.mxu1 %vm768_vm0, %v767_v0  ;;  %s107_s11 = scalar_lea.vmem %s879_s0, %s640_s8  ;;  %s781_s24 = smov 16  }
   0xe   : > { %v114_v1 = vld [vmem:[%s107_s11] sm:$0xf]  ;;  %s782_s25 = smov 24   ;;  %s111_s28 = scalar_lea.vmem %s880_s1, %s640_s8 }
   0xf   : > { %v815_v2 = vcombine.low %v114_v1, %v114_v1  ;;  %v115_v5 = vmul.bf16 1052065461, %v114_v1 }
  0x11   : > { %119 = vrot.lane.b32.xlu0 %v815_v2, %s769_s12  ;;  %180 = vrot.lane.b32.xlu1 %v815_v2, %s770_s13  ;;  %v645_v18 = vcombine.low %v115_v5, %v115_v5 }
  0x15   : > { %234 = vrot.lane.b32.xlu1 %v815_v2, %s771_s14 }
  0x83   : > { %v120_v3 = vpop.permute.xlu0 %119  ;;  %v181_v11 = vpop.permute.xlu1 %180 }
  0x84   : > { %v126_v4 = vsel %vm121_vm1, %v120_v3, 0  ;;  %v187_v12 = vsel %vm185_vm2, %v181_v11, 0 }
  0x85   : > { %671 = vmatpush3.bf16.xpose.msra.mxu0 %v126_v4  ;;  %677 = vmatpush3.bf16.msra.mxu1 %v187_v12 }
  0x86   : > { %688 = vmatprep.subr.bf16.mxu0 %v767_v0  ;;  %682 = vmatprep.subr.bf16.mxu1 %v767_v0 }
  0x87   : > { %v235_v19 = vpop.permute.xlu1 %234 }
  0x88   : > { %v240_v25 = vsel %vm121_vm1, %v235_v19, 0 }
  0x8c   : > { %673 = vmatmul.mubr.msk.bf16.vlgmr.msra.gmra.mxu0 %vm121_vm1, %v115_v5 }
  0x8d   : > { %690 = vmatprep.mubr.msk.bf16.mxu0 %vm768_vm0, %v767_v0 }
 0x14c   : > { %v162_v6 = vpop.f32.mrf.mxu0 }
 0x14d   : > { %v168_v7 = vsel %vm121_vm1, %v162_v6, -inf }
 0x14e   : > { %169 = vmax.xlane.f32.xlu0 %v168_v7  ;;  %v674_v8 = vpop.f32.mrf.mxu0 }
 0x150   : > { %v165_v9 = vpop.f32.mrf.mxu0 }
 0x152   : > { %v675_v10 = vpop.f32.mrf.mxu0 }
 0x164   : > { %454 = vrot.lane.b32.xlu0 %v815_v2, %s772_s15 }
 0x1d7   : > { %v170_v13 = vpop.xlane.xlu0 %169 }
 0x1d8   : > { %v171_v14 = vsub.f32 %v162_v6, %v170_v13 }
 0x1da   : > { %v172_v15 = vmul.f32 1.442695, %v171_v14 }
 0x1db   : > { %v455_v28 = vpop.permute.xlu0 %454 }
 0x1dc   : > { %743 = vpow2.f32 %v172_v15  ;;  %v460_v30 = vsel %vm121_vm1, %v455_v28, 0 }
 0x1e9   : > { %v744_v16 = vpop.eup %743 }
 0x1ea   : > { %v174_v17 = vsel %vm121_vm1, %v744_v16, 0.0 }
 0x1eb   : > { %175 = vadd.xlane.f32.xlu1 %v174_v17 }
 0x1fc   : > { %232 = vrot.lane.b32.xlu1 %v645_v18, %s773_s16 }
 0x200   : > { %344 = vrot.lane.b32.xlu1 %v815_v2, %s774_s17 }
 0x204   : > { %342 = vrot.lane.b32.xlu1 %v645_v18, %s775_s18 }
 0x208   : > { %452 = vrot.lane.b32.xlu1 %v645_v18, %s776_s19 }
 0x274   : > { %v176_v20 = vpop.xlane.xlu1 %175 }
 0x275   : > { %745 = vrcp.f32 %v176_v20 }
 0x278   : > { %v233_v23 = vpop.permute.xlu1 %232 }
 0x27c   : > { %v345_v26 = vpop.permute.xlu1 %344 }
 0x27d   : > { %v350_v27 = vsel %vm121_vm1, %v345_v26, 0 }
 0x280   : > { %v343_v29 = vpop.permute.xlu1 %342 }
 0x282   : > { %v746_v21 = vpop.eup %745 }
 0x283   : > { %v178_v22 = vmul.f32 %v746_v21, %v744_v16 }
 0x284   : > { %v453_v31 = vpop.permute.xlu1 %452 }
 0x285   : > { %v179_v24 = vpack.c.bf16 %v178_v22, %v178_v22 }
 0x287   : > { %679 = vmatmul.mubr.msk.bf16.vlgmr.msra.gmra.mxu1 %vm121_vm1, %v179_v24 }
 0x288   : > { %683 = vmatpush3.bf16.xpose.msra.mxu1 %v240_v25  ;;  %684 = vmatprep.mubr.msk.bf16.mxu1 %vm768_vm0, %v767_v0 }
 0x289   : > { %694 = vmatprep.subr.bf16.mxu1 %v767_v0 }
 0x28f   : > { %685 = vmatmul.mubr.msk.bf16.vlgmr.msra.gmra.mxu1 %vm121_vm1, %v233_v23 }
 0x290   : > { %695 = vmatpush3.bf16.xpose.msra.mxu1 %v350_v27  ;;  %696 = vmatprep.mubr.msk.bf16.mxu1 %vm768_vm0, %v767_v0 }
 0x291   : > { %706 = vmatprep.subr.bf16.mxu1 %v767_v0 }
 0x297   : > { %697 = vmatmul.mubr.msk.bf16.vlgmr.msra.gmra.mxu1 %vm121_vm1, %v343_v29 }
 0x298   : > { %707 = vmatpush3.bf16.xpose.msra.mxu1 %v460_v30  ;;  %708 = vmatprep.mubr.msk.bf16.mxu1 %vm768_vm0, %v767_v0 }
 0x29f   : > { %709 = vmatmul.mubr.msk.bf16.vlgmr.msra.gmra.mxu1 %vm121_vm1, %v453_v31 }
 0x347   : > { %v846_v32 = vpop.f32.mrf.mxu1 }
 0x349   : > { %v680_v33 = vpop.f32.mrf.mxu1 }
 0x34b   : > { %v226_v34 = vpop.f32.mrf.mxu1 }
 0x34d   : > { %v681_v35 = vpop.f32.mrf.mxu1 }
 0x34f   : > { %v276_v36 = vpop.f32.mrf.mxu1 }
 0x350   : > { %v282_v37 = vsel %vm121_vm1, %v276_v36, -inf }
 0x351   : > { %283 = vmax.xlane.f32.xlu1 %v282_v37  ;;  %v686_v38 = vpop.f32.mrf.mxu1 }
 0x353   : > { %v279_v39 = vpop.f32.mrf.mxu1 }
 0x355   : > { %v687_v40 = vpop.f32.mrf.mxu1 }
 0x357   : > { %v386_v41 = vpop.f32.mrf.mxu1 }
 0x358   : > { %v392_v42 = vsel %vm121_vm1, %v386_v41, -inf }
 0x359   : > { %393 = vmax.xlane.f32.xlu0 %v392_v42  ;;  %v698_v43 = vpop.f32.mrf.mxu1 }
 0x35b   : > { %v389_v44 = vpop.f32.mrf.mxu1 }
 0x35d   : > { %v699_v45 = vpop.f32.mrf.mxu1 }
 0x35f   : > { %v496_v46 = vpop.f32.mrf.mxu1 }
 0x360   : > { %v502_v47 = vsel %vm121_vm1, %v496_v46, -inf }
 0x361   : > { %503 = vmax.xlane.f32.xlu1 %v502_v47  ;;  %v710_v48 = vpop.f32.mrf.mxu1 }
 0x363   : > { %v499_v49 = vpop.f32.mrf.mxu1 }
 0x365   : > { %v711_v50 = vpop.f32.mrf.mxu1 }
 0x3da   : > { %v284_v51 = vpop.xlane.xlu1 %283 }
 0x3db   : > { %v285_v52 = vsub.f32 %v276_v36, %v284_v51 }
 0x3dd   : > { %v286_v53 = vmul.f32 1.442695, %v285_v52 }
 0x3df   : > { %747 = vpow2.f32 %v286_v53 }
 0x3e2   : > { %v394_v61 = vpop.xlane.xlu0 %393 }
 0x3e3   : > { %v395_v62 = vsub.f32 %v386_v41, %v394_v61 }
 0x3e5   : > { %v396_v63 = vmul.f32 1.442695, %v395_v62 }
 0x3ea   : > { %v504_v54 = vpop.xlane.xlu1 %503 }
 0x3eb   : > { %v505_v55 = vsub.f32 %v496_v46, %v504_v54 }
 0x3ec   : > { %v748_v56 = vpop.eup %747 }
 0x3ed   : > { %v506_v57 = vmul.f32 1.442695, %v505_v55  ;;  %v288_v58 = vsel %vm121_vm1, %v748_v56, 0.0 }
 0x3ee   : > { %289 = vadd.xlane.f32.xlu1 %v288_v58 }
 0x3ef   : > { %749 = vpow2.f32 %v506_v57 }
 0x3f0   : > { %751 = vpow2.f32 %v396_v63 }
 0x3fc   : > { %v750_v59 = vpop.eup %749 }
 0x3fd   : > { %v508_v60 = vsel %vm121_vm1, %v750_v59, 0.0  ;;  %v752_v1 = vpop.eup %751 }
 0x3fe   : > { %509 = vadd.xlane.f32.xlu0 %v508_v60  ;;  %v398_v3 = vsel %vm121_vm1, %v752_v1, 0.0 }
 0x3ff   : > { %294 = vrot.lane.b32.xlu1 %v815_v2, %s777_s20 }
 0x414   : > { %404 = vrot.lane.b32.xlu0 %v815_v2, %s778_s21 }
 0x423   : > { %399 = vadd.xlane.f32.xlu1 %v398_v3 }
 0x434   : > { %514 = vrot.lane.b32.xlu1 %v815_v2, %s779_s22 }
 0x477   : > { %v290_v4 = vpop.xlane.xlu1 %289 }
 0x478   : > { %753 = vrcp.f32 %v290_v4 }
 0x47b   : > { %v295_v5 = vpop.permute.xlu1 %294 }
 0x47c   : > { %v300_v6 = vsel %vm185_vm2, %v295_v5, 0 }
 0x47d   : > { %689 = vmatpush3.bf16.msra.mxu0 %v300_v6 }
 0x47e   : > { %700 = vmatprep.subr.bf16.mxu0 %v767_v0 }
 0x485   : > { %v754_v7 = vpop.eup %753 }
 0x486   : > { %v292_v8 = vmul.f32 %v754_v7, %v748_v56 }
 0x487   : > { %v510_v9 = vpop.xlane.xlu0 %509 }
 0x488   : > { %v293_v10 = vpack.c.bf16 %v292_v8, %v292_v8 }
 0x48a   : > { %691 = vmatmul.mubr.msk.bf16.vlgmr.msra.gmra.mxu0 %vm121_vm1, %v293_v10 }
 0x48b   : > { %v405_v11 = vpop.permute.xlu0 %404  ;;  %702 = vmatprep.mubr.msk.bf16.mxu0 %vm768_vm0, %v767_v0 }
 0x48c   : > { %v410_v2 = vsel %vm185_vm2, %v405_v11, 0 }
 0x48d   : > { %701 = vmatpush3.bf16.msra.mxu0 %v410_v2 }
 0x48e   : > { %712 = vmatprep.subr.bf16.mxu0 %v767_v0 }
 0x4ac   : > { %v400_v12 = vpop.xlane.xlu1 %399 }
 0x4ad   : > { %755 = vrcp.f32 %v400_v12 }
 0x4ae   : > { %757 = vrcp.f32 %v510_v9 }
 0x4b0   : > { %v515_v14 = vpop.permute.xlu1 %514 }
 0x4b1   : > { %v520_v16 = vsel %vm185_vm2, %v515_v14, 0 }
 0x4ba   : > { %v756_v13 = vpop.eup %755 }
 0x4bb   : > { %v402_v15 = vmul.f32 %v756_v13, %v752_v1  ;;  %v758_v18 = vpop.eup %757 }
 0x4bc   : > { %v512_v19 = vmul.f32 %v758_v18, %v750_v59 }
 0x4bd   : > { %v403_v17 = vpack.c.bf16 %v402_v15, %v402_v15 }
 0x4be   : > { %v513_v20 = vpack.c.bf16 %v512_v19, %v512_v19 }
 0x4bf   : > { %703 = vmatmul.mubr.msk.bf16.vlgmr.msra.gmra.mxu0 %vm121_vm1, %v403_v17 }
 0x4c0   : > { %713 = vmatpush3.bf16.msra.mxu0 %v520_v16  ;;  %714 = vmatprep.mubr.msk.bf16.mxu0 %vm768_vm0, %v767_v0 }
 0x4c7   : > { %715 = vmatmul.mubr.msk.bf16.vlgmr.msra.gmra.mxu0 %vm121_vm1, %v513_v20 }
 0x54a   : > { %v336_v21 = vpop.f32.mrf.mxu0 }
 0x54b   : > { %563 = vrot.lane.b32.xlu1 %v336_v21, %s780_s23 }
 0x54c   : > { %v692_v22 = vpop.f32.mrf.mxu0 }
 0x54e   : > { %v339_v23 = vpop.f32.mrf.mxu0 }
 0x550   : > { %v693_v24 = vpop.f32.mrf.mxu0 }
 0x57f   : > { %v446_v25 = vpop.f32.mrf.mxu0 }
 0x580   : > { %567 = vrot.lane.b32.xlu0 %v446_v25, %s781_s24 }
 0x581   : > { %v704_v26 = vpop.f32.mrf.mxu0 }
 0x583   : > { %v449_v27 = vpop.f32.mrf.mxu0 }
 0x585   : > { %v705_v28 = vpop.f32.mrf.mxu0 }
 0x587   : > { %v556_v29 = vpop.f32.mrf.mxu0 }
 0x588   : > { %571 = vrot.lane.b32.xlu1 %v556_v29, %s782_s25 }
 0x589   : > { %v716_v0 = vpop.f32.mrf.mxu0 }
 0x58b   : > { %v559_v30 = vpop.f32.mrf.mxu0 }
 0x58d   : > { %v717_v31 = vpop.f32.mrf.mxu0 }
 0x5bd   : > { %v564_v33 = vpop.permute.xlu1 %563 }
 0x5be   : > { %v574_v35 = vsel %vm121_vm1, %v846_v32, %v564_v33 }
 0x5f2   : > { %v568_v34 = vpop.permute.xlu0 %567 }
 0x5f3   : > { %v576_v36 = vsel %vm575_vm3, %v574_v35, %v568_v34 }
 0x5fa   : > { %v572_v37 = vpop.permute.xlu1 %571 }
 0x5fb   : > { %v578_v38 = vsel %vm577_vm4, %v576_v36, %v572_v37 }
 0x5fc   : > { %v579_v39 = vpack.c.bf16 %v578_v38, %v578_v38 }
 0x5fe   : > { %581 = vst.msk [vmem:[%s111_s28] sm:$0xf] %vm580_vm5, %v579_v39 }
 0x5ff PF: > { %s11_s6 = sadd.s32 1, %s765_s6  }
 0x600   : > { %p8_p4 = scmp.ge.s32.totalorder %s11_s6, 4  }
 0x602   :  { %10 = sbr.rel (!%p8_p4) target bundleno = 1 (0x1), region = 54 }

// kernel: bert_forward.19
= control target key start
LH: loop header
LB: loop body
LE: loop exit
PB: predicated region body
PF: predicated region fallthrough
CT: control target
= control target key end

     0   :  { %vm27_vm0 = vcmask 261120   ;;  %vm81_vm1 = vcmask 257024   ;;  %s153_s0 = inlined_call_operand.vmem [shape: bf16[16,32], index: 0, kind: input, shape index: {}]   ;;  %s154_s1 = inlined_call_operand.vmem [shape: bf16[16,32], index: 1, kind: input, shape index: {}]   ;;  %s155_s2 = inlined_call_operand.vmem [shape: f32[1,32], index: 2, kind: input, shape index: {}]   ;;  %s156_s3 = inlined_call_operand.vmem [shape: f32[1,32], index: 3, kind: input, shape index: {}]   ;;  %s157_s4 = inlined_call_operand.vmem [shape: bf16[16,32], index: 4, kind: output, shape index: {}]  }
   0x1   :  { %v95_v0 = vld [vmem:[%s153_s0] sm:$0xff]  }
   0x2   :  { %v99_v1 = vld [vmem:[%s154_s1] sm:$0xff]   ;;  %v96_v2 = vunpack.c.l.bf16 %v95_v0  ;;  %v97_v4 = vunpack.c.h.bf16 %v95_v0 }
   0x3   :  { %v100_v3 = vunpack.c.l.bf16 %v99_v1  ;;  %v101_v5 = vunpack.c.h.bf16 %v99_v1  ;;  %v88_v27 = vld [vmem:[%s155_s2] ss:$0 sm:$0xff] }
   0x4   :  { %v89_v29 = vld [vmem:[%s156_s3] ss:$0 sm:$0xff] }
   0x5   :  { %v25_v6 = vadd.f32 %v100_v3, %v96_v2  ;;  %v26_v7 = vadd.f32 %v101_v5, %v97_v4 }
   0x7   :  { %v28_v8 = vsel %vm27_vm0, %v25_v6, 0.0  ;;  %v31_v9 = vsel %vm27_vm0, %v26_v7, 0.0 }
   0x8   :  { %29 = vadd.xlane.f32.xlu0 %v28_v8 }
   0xc   :  { %32 = vadd.xlane.f32.xlu0 %v31_v9 }
  0x91   :  { %v30_v10 = vpop.xlane.xlu0 %29 }
  0x92   :  { %v35_v11 = vmul.f32 0.03125, %v30_v10 }
  0x94   :  { %v37_v12 = vsub.f32 %v25_v6, %v35_v11 }
  0x95   :  { %v33_v13 = vpop.xlane.xlu0 %32 }
  0x96   :  { %v36_v14 = vmul.f32 0.03125, %v33_v13  ;;  %v39_v15 = vmul.f32 %v37_v12, %v37_v12 }
  0x98   :  { %v38_v16 = vsub.f32 %v26_v7, %v36_v14  ;;  %v41_v17 = vsel %vm27_vm0, %v39_v15, 0.0 }
  0x99   :  { %42 = vadd.xlane.f32.xlu1 %v41_v17 }
  0x9a   :  { %v40_v18 = vmul.f32 %v38_v16, %v38_v16 }
  0x9c   :  { %v44_v19 = vsel %vm27_vm0, %v40_v18, 0.0 }
  0x9d   :  { %45 = vadd.xlane.f32.xlu1 %v44_v19 }
 0x122   :  { %v43_v20 = vpop.xlane.xlu1 %42 }
 0x123   :  { %v47_v21 = vmul.f32 0.03125, %v43_v20 }
 0x125   :  { %v49_v22 = vadd.f32 1e-12, %v47_v21 }
 0x126   :  { %v46_v23 = vpop.xlane.xlu1 %45 }
 0x127   :  { %102 = vrsqrt.f32 %v49_v22  ;;  %v48_v24 = vmul.f32 0.03125, %v46_v23 }
 0x129   :  { %v50_v25 = vadd.f32 1e-12, %v48_v24 }
 0x12b   :  { %104 = vrsqrt.f32 %v50_v25 }
 0x134   :  { %v103_v26 = vpop.eup %102 }
 0x135   :  { %v53_v28 = vmul.f32 %v103_v26, %v37_v12 }
 0x137   :  { %v62_v30 = vmul.f32 %v88_v27, %v53_v28 }
 0x138   :  { %v105_v31 = vpop.eup %104 }
 0x139   :  { %v71_v32 = vadd.f32 %v89_v29, %v62_v30  ;;  %v54_v33 = vmul.f32 %v105_v31, %v38_v16 }
 0x13b   :  { %v92_v34 = vpack.c.bf16 %v71_v32, %v71_v32  ;;  %v63_v35 = vmul.f32 %v88_v27, %v54_v33 }
 0x13d   :  { %82 = vst.msk [vmem:[%s157_s4] sm:$0xf] %vm81_vm1, %v92_v34  ;;  %v72_v36 = vadd.f32 %v89_v29, %v63_v35 }
 0x13f   :  { %v93_v37 = vpack.c.bf16 %v72_v36, %v72_v36 }
 0x141   :  { %83 = vst.msk [vmem:[%s157_s4 + $0x4] sm:$0xf] %vm81_vm1, %v93_v37 }

// kernel: bert_forward.20
= control target key start
LH: loop header
LB: loop body
LE: loop exit
PB: predicated region body
PF: predicated region fallthrough
CT: control target
= control target key end

     0   :  { %vm19_vm0 = vcmask 523264   ;;  %v165_v0 = vmov 0.0   ;;  %vm166_vm1 = vmmov 0   ;;  %vm47_vm2 = vcmask 261120   ;;  %s209_s1 = inlined_call_operand.vmem [shape: bf16[32,64], index: 1, kind: input, shape index: {}]   ;;  %s210_s0 = inlined_call_operand.vmem [shape: bf16[16,32], index: 0, kind: input, shape index: {}]   ;;  %s211_s2 = inlined_call_operand.vmem [shape: f32[1,64], index: 2, kind: input, shape index: {}]   ;;  %s212_s3 = inlined_call_operand.vmem [shape: bf16[16,64], index: 3, kind: output, shape index: {}]  }
   0x1   :  { %148 = vmatprep.subr.bf16.mxu0 %v165_v0  ;;  %v158_v1 = vld [vmem:[%s209_s1 + $0x8] sm:$0xff]   ;;  %152 = vmatprep.mubr.msk.bf16.mxu0 %vm166_vm1, %v165_v0  ;;  %20 = vst.msk [vmem:[#allocation2] sm:$0xff] %vm19_vm0, %v165_v0  ;;  %21 = vst.msk [vmem:[#allocation2 + $0x8] sm:$0xff] %vm19_vm0, %v165_v0  ;;  %v159_v2 = vld [vmem:[%s209_s1] sm:$0xff]   ;;  %vm129_vm3 = vcmask 519168  }
   0x2   :  { %149 = vmatpush3.bf16.msra.mxu0 %v158_v1  ;;  %v160_v3 = vld [vmem:[%s210_s0] sm:$0xff]  }
   0x3   :  { %150 = vmatprep.subr.bf16.mxu0 %v165_v0  ;;  %v140_v12 = vld [vmem:[%s211_s2] ss:$0 sm:$0xff] }
   0x6   :  { %151 = vmatpush3.bf16.msra.mxu0 %v159_v2 }
   0x8   :  { %v22_v4 = vld [vmem:[#allocation2] sm:$0xff]  ;;  %v23_v8 = vld [vmem:[#allocation2 + $0x8] sm:$0xff] }
   0x9   :  { %153 = vmatmul.mubr.msk.bf16.vlgmr.msra.gmra.mxu0 %vm47_vm2, %v160_v3 }
  0xc9   :  { %v85_v5 = vpop.f32.mrf.mxu0 }
  0xca   :  { %v92_v6 = vadd.f32 %v85_v5, %v22_v4 }
  0xcb   :  { %v154_v7 = vpop.f32.mrf.mxu0 }
  0xcc   :  { %95 = vst.msk [vmem:[#allocation2] sm:$0xff] %vm19_vm0, %v92_v6 }
  0xcd   :  { %v88_v9 = vpop.f32.mrf.mxu0 }
  0xce   :  { %v93_v10 = vadd.f32 %v88_v9, %v23_v8 }
  0xcf   :  { %v155_v11 = vpop.f32.mrf.mxu0 }
  0xd0   :  { %96 = vst.msk [vmem:[#allocation2 + $0x8] sm:$0xff] %vm19_vm0, %v93_v10 }
  0xd3   :  { %v100_v13 = vld [vmem:[#allocation2] sm:$0xff] }
  0xd4   :  { %v109_v14 = vadd.f32 %v140_v12, %v100_v13 }
  0xd6   :  { %v113_v15 = vmul.f32 0.70710677, %v109_v14  ;;  %v111_v20 = vmul.f32 0.5, %v109_v14 }
  0xd7   :  { %v101_v16 = vld [vmem:[#allocation2 + $0x8] sm:$0xff] }
  0xd8   :  { %161 = verf.f32 %v113_v15  ;;  %v110_v17 = vadd.f32 %v140_v12, %v101_v16 }
  0xda   :  { %v114_v18 = vmul.f32 0.70710677, %v110_v17  ;;  %v112_v25 = vmul.f32 0.5, %v110_v17 }
  0xdc   :  { %163 = verf.f32 %v114_v18 }
  0xe5   :  { %v162_v19 = vpop.eup %161 }
  0xe6   :  { %v117_v21 = vadd.f32 1.0, %v162_v19 }
  0xe8   :  { %v119_v22 = vmul.f32 %v117_v21, %v111_v20 }
  0xe9   :  { %v164_v23 = vpop.eup %163 }
  0xea   :  { %v143_v24 = vpack.c.bf16 %v119_v22, %v119_v22  ;;  %v118_v26 = vadd.f32 1.0, %v164_v23 }
  0xec   :  { %130 = vst.msk [vmem:[%s212_s3] sm:$0xf] %vm129_vm3, %v143_v24  ;;  %v120_v27 = vmul.f32 %v118_v26, %v112_v25 }
  0xee   :  { %v144_v28 = vpack.c.bf16 %v120_v27, %v120_v27 }
  0xf0   :  { %131 = vst.msk [vmem:[%s212_s3 + $0x4] sm:$0xf] %vm129_vm3, %v144_v28 }

// kernel: bert_forward.21
= control target key start
LH: loop header
LB: loop body
LE: loop exit
PB: predicated region body
PF: predicated region fallthrough
CT: control target
= control target key end

     0   :  { %vm19_vm0 = vcmask 261120   ;;  %v177_v0 = vmov 0.0   ;;  %vm178_vm1 = vmmov 0   ;;  %vm63_vm2 = vcmask 523264   ;;  %s227_s1 = inlined_call_operand.vmem [shape: bf16[64,32], index: 1, kind: input, shape index: {}]   ;;  %s228_s0 = inlined_call_operand.vmem [shape: bf16[16,64], index: 0, kind: input, shape index: {}]   ;;  %s229_s2 = inlined_call_operand.vmem [shape: f32[1,32], index: 2, kind: input, shape index: {}]   ;;  %s230_s3 = inlined_call_operand.vmem [shape: bf16[16,32], index: 3, kind: output, shape index: {}]  }
   0x1   :  { %158 = vmatprep.subr.bf16.mxu0 %v177_v0  ;;  %v172_v1 = vld [vmem:[%s227_s1 + $0x18] sm:$0xff]   ;;  %166 = vmatprep.mubr.msk.bf16.mxu0 %vm178_vm1, %v177_v0  ;;  %20 = vst.msk [vmem:[#allocation2] sm:$0xff] %vm19_vm0, %v177_v0  ;;  %21 = vst.msk [vmem:[#allocation2 + $0x8] sm:$0xff] %vm19_vm0, %v177_v0  ;;  %v173_v2 = vld [vmem:[%s227_s1 + $0x10] sm:$0xff]   ;;  %vm135_vm3 = vcmask 257024  }
   0x2   :  { %159 = vmatpush3.bf16.msra.mxu0 %v172_v1  ;;  %v174_v3 = vld [vmem:[%s227_s1 + $0x8] sm:$0xff]   ;;  %v175_v4 = vld [vmem:[%s227_s1] sm:$0xff]  }
   0x3   :  { %160 = vmatprep.subr.bf16.mxu0 %v177_v0  ;;  %v176_v5 = vld [vmem:[%s228_s0] sm:$0xff]  }
   0x4   :  { %v148_v14 = vld [vmem:[%s229_s2] ss:$0 sm:$0xff] }
   0x6   :  { %161 = vmatpush3.bf16.msra.mxu0 %v173_v2 }
   0x7   :  { %162 = vmatprep.subr.bf16.mxu0 %v177_v0 }
   0x8   :  { %v22_v6 = vld [vmem:[#allocation2] sm:$0xff]  ;;  %v23_v10 = vld [vmem:[#allocation2 + $0x8] sm:$0xff] }
   0xa   :  { %163 = vmatpush3.bf16.msra.mxu0 %v174_v3 }
   0xb   :  { %164 = vmatprep.subr.bf16.mxu0 %v177_v0 }
   0xe   :  { %165 = vmatpush3.bf16.msra.mxu0 %v175_v4 }
  0x11   :  { %167 = vmatmul.mubr.msk.bf16.vlgmr.msra.gmra.mxu0 %vm63_vm2, %v176_v5 }
  0xd1   :  { %v101_v7 = vpop.f32.mrf.mxu0 }
  0xd2   :  { %v108_v8 = vadd.f32 %v101_v7, %v22_v6 }
  0xd3   :  { %v168_v9 = vpop.f32.mrf.mxu0 }
  0xd4   :  { %111 = vst.msk [vmem:[#allocation2] sm:$0xff] %vm19_vm0, %v108_v8 }
  0xd5   :  { %v104_v11 = vpop.f32.mrf.mxu0 }
  0xd6   :  { %v109_v12 = vadd.f32 %v104_v11, %v23_v10 }
  0xd7   :  { %v169_v13 = vpop.f32.mrf.mxu0 }
  0xd8   :  { %112 = vst.msk [vmem:[#allocation2 + $0x8] sm:$0xff] %vm19_vm0, %v109_v12 }
  0xdb   :  { %v116_v15 = vld [vmem:[#allocation2] sm:$0xff] }
  0xdc   :  { %v125_v16 = vadd.f32 %v148_v14, %v116_v15 }
  0xde   :  { %v151_v17 = vpack.c.bf16 %v125_v16, %v125_v16 }
  0xdf   :  { %v117_v18 = vld [vmem:[#allocation2 + $0x8] sm:$0xff] }
  0xe0   :  { %136 = vst.msk [vmem:[%s230_s3] sm:$0xf] %vm135_vm3, %v151_v17  ;;  %v126_v19 = vadd.f32 %v148_v14, %v117_v18 }
  0xe2   :  { %v152_v20 = vpack.c.bf16 %v126_v19, %v126_v19 }
  0xe4   :  { %137 = vst.msk [vmem:[%s230_s3 + $0x4] sm:$0xf] %vm135_vm3, %v152_v20 }

</bundles_post_ra>
